<compile_context>
chip_gen: v5e
topology: v5e:2x2
jax: 0.10.0
libtpu: 0.0.40
codegen_flags: <defaults>
</compile_context>

<pallas_src>
import math

import jax
import jax.numpy as jnp
from jax.experimental import pallas as pl
from jax.experimental.pallas import tpu as pltpu


# ---------------------------------------------------------------------------
# Pallas kernel: (optional mul) -> conv3x3(stride=1, pad=1) -> BN -> ReLU
# ---------------------------------------------------------------------------
def _conv3x3_bn_relu_kernel(H, W, cin, cout, fuse_mul):
    """Kernel body for one fused stride-1 conv block.

    Layout trick: the input is zero-padded to (H+3, W+2) and flattened to
    m_in = (H+3)*(W+2) columns (lane axis).  For stride-1/pad-1 the tap
    (kh, kw) contribution to flattened output column q is column
    q + kh*(W+2) + kw of the input, so every tap is a contiguous lane window
    and each tap is one (cout, cin) x (cin, m_out) MXU matmul.  Two junk
    columns per image row are computed and discarded by the wrapper.
    """
    Wp = W + 2
    m_out = H * Wp
    offs = [kh * Wp + kw for kh in range(3) for kw in range(3)]

    def kernel(*refs):
        if fuse_mul:
            a_ref, b_ref, w_ref, scale_ref, shift_ref, o_ref = refs
            # multiply in f32 for accuracy, round the product to bf16 for the MXU
            x = (a_ref[0].astype(jnp.float32) * b_ref[0].astype(jnp.float32)
                 ).astype(jnp.bfloat16)                      # (cin, m_in)
        else:
            a_ref, w_ref, scale_ref, shift_ref, o_ref = refs
            x = a_ref[0]                                      # already bf16

        acc = jnp.zeros((cout, m_out), jnp.float32)
        for t, off in enumerate(offs):                        # 9 taps, unrolled
            tap = x[:, off:off + m_out]                       # (cin, m_out) bf16
            acc = acc + jnp.dot(w_ref[t], tap,
                                preferred_element_type=jnp.float32)

        y = acc * scale_ref[...] + shift_ref[...]             # folded BN (f32)
        o_ref[0] = jnp.maximum(y, 0.0).astype(o_ref.dtype)    # ReLU

    return kernel


def _fold_bn(gamma, beta, mean, var, eps):
    inv_std = 1.0 / jnp.sqrt(var.astype(jnp.float32) + eps)
    scale = (gamma.astype(jnp.float32) * inv_std)
    shift = (beta.astype(jnp.float32)
             - mean.astype(jnp.float32) * gamma.astype(jnp.float32) * inv_std)
    return scale[:, None], shift[:, None]


def _weight_taps(weight):
    cout, cin = weight.shape[0], weight.shape[1]
    # OIHW -> (tap = kh*3+kw, cout, cin), bf16 for the MXU
    return jnp.transpose(weight, (2, 3, 0, 1)).reshape(9, cout, cin).astype(jnp.bfloat16)


def _fused_conv3x3_bn_relu(a, b, weight, gamma, beta, mean, var, *, eps=1e-5):
    """ReLU(BN(conv3x3(a * b))), stride=1, pad=1.  NCHW in / NCHW out.

    `b=None` skips the elementwise pre-multiply.  BN uses running statistics,
    folded into a per-channel scale/shift.
    """
    n, cin, H, W = a.shape
    cout = weight.shape[0]
    Wp = W + 2
    m_in = (H + 3) * Wp            # pad rows (1 top, 2 bottom) -> every tap window in-bounds
    m_out = H * Wp

    def prep(x):
        xp = jnp.pad(x.astype(jnp.float32), ((0, 0), (0, 0), (1, 2), (1, 1)))
        return xp.reshape(n, cin, m_in).astype(jnp.bfloat16)  # bf16 halves DMA bytes

    operands = [prep(a)]
    fuse_mul = b is not None
    if fuse_mul:
        operands.append(prep(b))

    w_taps = _weight_taps(weight)
    scale, shift = _fold_bn(gamma, beta, mean, var, eps)

    act_spec = pl.BlockSpec((1, cin, m_in), lambda i: (i, 0, 0))
    in_specs = [act_spec] * len(operands) + [
        pl.BlockSpec((9, cout, cin), lambda i: (0, 0, 0)),
        pl.BlockSpec((cout, 1), lambda i: (0, 0)),
        pl.BlockSpec((cout, 1), lambda i: (0, 0)),
    ]

    flops = 2 * n * 9 * cout * cin * m_out
    bytes_accessed = (len(operands) * n * cin * m_in * 2      # bf16 activations
                      + 9 * cout * cin * 2                    # bf16 weights
                      + n * cout * m_out * 4)                 # f32 output

    out_flat = pl.pallas_call(
        _conv3x3_bn_relu_kernel(H, W, cin, cout, fuse_mul),
        out_shape=jax.ShapeDtypeStruct((n, cout, m_out), jnp.float32),
        grid=(n,),
        in_specs=in_specs,
        out_specs=pl.BlockSpec((1, cout, m_out), lambda i: (i, 0, 0)),
        compiler_params=pltpu.CompilerParams(
            dimension_semantics=("parallel",),
            vmem_limit_bytes=48 * 1024 * 1024),
        cost_estimate=pl.CostEstimate(flops=flops, transcendentals=0,
                                      bytes_accessed=bytes_accessed),
    )(*operands, w_taps, scale, shift)

    # drop the 2 junk columns per image row and restore NCHW (no transpose needed)
    return out_flat.reshape(n, cout, H, Wp)[:, :, :, :W]


# ---------------------------------------------------------------------------
# Pallas kernel: conv3x3(stride=2, pad=1) -> BN -> ReLU  (polyphase, 9 taps)
# ---------------------------------------------------------------------------
def _conv3x3s2_bn_relu_kernel(Ho, Wph, cin, cout):
    """Stride-2 conv via 4 polyphase sub-images of the padded input.

    phase(pr,pc)[i,j] = xpad[2i+pr, 2j+pc]; tap (kh,kw) reads
    phase(kh%2, kw%2)[oh + kh//2, ow + kw//2], i.e. a contiguous lane window
    of the flattened phase at offset (kh//2)*Wph + (kw//2).  One junk column
    per output row is discarded by the wrapper.
    """
    m_out = Ho * Wph

    def kernel(x_ref, w_ref, scale_ref, shift_ref, o_ref):
        x = x_ref[0]                                          # (4, cin, m_phase) bf16
        acc = jnp.zeros((cout, m_out), jnp.float32)
        for kh in range(3):                                   # 9 taps, unrolled
            for kw in range(3):
                t = kh * 3 + kw
                p = (kh % 2) * 2 + (kw % 2)
                off = (kh // 2) * Wph + (kw // 2)
                tap = x[p][:, off:off + m_out]                # (cin, m_out) bf16
                acc = acc + jnp.dot(w_ref[t], tap,
                                    preferred_element_type=jnp.float32)
        y = acc * scale_ref[...] + shift_ref[...]             # folded BN (f32)
        o_ref[0] = jnp.maximum(y, 0.0).astype(o_ref.dtype)    # ReLU

    return kernel


def _fused_conv3x3s2_bn_relu(a, weight, gamma, beta, mean, var, *, eps=1e-5):
    """ReLU(BN(conv3x3_stride2(a))), pad=1.  NCHW in / NCHW out (H/2, W/2)."""
    n, cin, H, W = a.shape
    assert H % 2 == 0 and W % 2 == 0, "stride-2 path expects even spatial dims"
    cout = weight.shape[0]
    Ho, Wo = H // 2, W // 2
    Wph = Wo + 1
    m_out = Ho * Wph
    m_phase = (Ho + 2) * Wph       # +2 rows of zero pad so every tap window is in-bounds

    xpad = jnp.pad(a.astype(jnp.float32), ((0, 0), (0, 0), (1, 1), (1, 1)))
    # 4 polyphase sub-images of the padded input, each (Ho+1, Wo+1)
    phases = jnp.stack([xpad[:, :, pr::2, pc::2]
                        for pr in range(2) for pc in range(2)], axis=1)
    phases = jnp.pad(phases, ((0, 0), (0, 0), (0, 0), (0, 1), (0, 0)))
    phases = phases.reshape(n, 4, cin, m_phase).astype(jnp.bfloat16)

    w_taps = _weight_taps(weight)
    scale, shift = _fold_bn(gamma, beta, mean, var, eps)

    flops = 2 * n * 9 * cout * cin * m_out
    bytes_accessed = (n * 4 * cin * m_phase * 2               # bf16 activations
                      + 9 * cout * cin * 2                    # bf16 weights
                      + n * cout * m_out * 4)                 # f32 output

    out_flat = pl.pallas_call(
        _conv3x3s2_bn_relu_kernel(Ho, Wph, cin, cout),
        out_shape=jax.ShapeDtypeStruct((n, cout, m_out), jnp.float32),
        grid=(n,),
        in_specs=[
            pl.BlockSpec((1, 4, cin, m_phase), lambda i: (i, 0, 0, 0)),
            pl.BlockSpec((9, cout, cin), lambda i: (0, 0, 0)),
            pl.BlockSpec((cout, 1), lambda i: (0, 0)),
            pl.BlockSpec((cout, 1), lambda i: (0, 0)),
        ],
        out_specs=pl.BlockSpec((1, cout, m_out), lambda i: (i, 0, 0)),
        compiler_params=pltpu.CompilerParams(
            dimension_semantics=("parallel",),
            vmem_limit_bytes=48 * 1024 * 1024),
        cost_estimate=pl.CostEstimate(flops=flops, transcendentals=0,
                                      bytes_accessed=bytes_accessed),
    )(phases, w_taps, scale, shift)

    # drop the 1 junk column per output row and restore NCHW
    return out_flat.reshape(n, cout, Ho, Wph)[:, :, :, :Wo]


# ---------------------------------------------------------------------------
# Plain-JAX glue: bilinear resize with align_corners=True (matches F.interpolate)
# ---------------------------------------------------------------------------
def _upsample_bilinear_align_corners(x, out_h, out_w):
    n, c, h, w = x.shape
    x = x.astype(jnp.float32)

    def axis_weights(out_size, in_size):
        if out_size == 1 or in_size == 1:
            i0 = jnp.zeros((out_size,), jnp.int32)
            return i0, i0, jnp.zeros((out_size,), jnp.float32)
        src = jnp.arange(out_size, dtype=jnp.float32) * ((in_size - 1) / (out_size - 1))
        i0 = jnp.clip(jnp.floor(src).astype(jnp.int32), 0, in_size - 2)
        frac = src - i0.astype(jnp.float32)
        return i0, i0 + 1, frac

    h0, h1, fh = axis_weights(out_h, h)
    w0, w1, fw = axis_weights(out_w, w)
    xa = jnp.take(x, h0, axis=2)
    xb = jnp.take(x, h1, axis=2)
    xh = xa + (xb - xa) * fh[None, None, :, None]
    xc = jnp.take(xh, w0, axis=3)
    xd = jnp.take(xh, w1, axis=3)
    return xc + (xd - xc) * fw[None, None, None, :]


# ---------------------------------------------------------------------------
# CAM forward (Pallas kernels + JAX glue)
# ---------------------------------------------------------------------------
def cam_forward(x_high, x_low, params):
    n, c, Hl, Wl = x_low.shape
    nh, ch, Hh, Wh = x_high.shape
    assert (n, c) == (nh, ch)

    # down: conv3x3 stride=2 + BN + ReLU (dedicated polyphase kernel)
    left_2 = _fused_conv3x3s2_bn_relu(x_low, params["w_down"], *params["bn_down"])
    assert left_2.shape[2:] == (Hh, Wh)

    right_1 = _upsample_bilinear_align_corners(x_high, Hl, Wl)

    left = _fused_conv3x3_bn_relu(x_low, right_1, params["w1"], *params["bn1"])
    right = _fused_conv3x3_bn_relu(left_2, x_high, params["w2"], *params["bn2"])
    right = _upsample_bilinear_align_corners(right, Hl, Wl)

    # FFM(left, right)
    out = _fused_conv3x3_bn_relu(left, right, params["wf1"], *params["bnf1"])
    out = _fused_conv3x3_bn_relu(out, None, params["wf2"], *params["bnf2"])
    return out


# ---------------------------------------------------------------------------
# Reference (lax.conv based), precision-matched to the kernel's bf16 operands
# ---------------------------------------------------------------------------
def _ref_block(x_a, x_b, w, gamma, beta, mean, var, *, stride=1, eps=1e-5):
    def r(t):  # same bf16 rounding of matmul operands as the kernel
        return t.astype(jnp.bfloat16).astype(jnp.float32)

    if x_b is None:
        x = r(x_a)
    else:
        x = (r(x_a) * r(x_b)).astype(jnp.bfloat16).astype(jnp.float32)
    y = jax.lax.conv_general_dilated(
        x, r(w), window_strides=(stride, stride), padding=((1, 1), (1, 1)),
        dimension_numbers=("NCHW", "OIHW", "NCHW"),
        precision=jax.lax.Precision.HIGHEST)
    inv = 1.0 / jnp.sqrt(var + eps)
    y = y * (gamma * inv)[None, :, None, None] \
        + (beta - mean * gamma * inv)[None, :, None, None]
    return jnp.maximum(y, 0.0)


def _reference_cam(x_high, x_low, params):
    Hl, Wl = x_low.shape[2:]
    left_2 = _ref_block(x_low, None, params["w_down"], *params["bn_down"], stride=2)
    right_1 = _upsample_bilinear_align_corners(x_high, Hl, Wl)
    left = _ref_block(x_low, right_1, params["w1"], *params["bn1"])
    right = _ref_block(left_2, x_high, params["w2"], *params["bn2"])
    right = _upsample_bilinear_align_corners(right, Hl, Wl)
    out = _ref_block(left, right, params["wf1"], *params["bnf1"])
    out = _ref_block(out, None, params["wf2"], *params["bnf2"])
    return out


# ---------------------------------------------------------------------------
if __name__ == "__main__":
    N, C = 2, 16
    Hl = Wl = 16          # x_low spatial
    Hh = Wh = 8           # x_high spatial (= Hl/2, matches the stride-2 down path)

    key = jax.random.PRNGKey(0)
    ks = jax.random.split(key, 7)

    # weight_init(): Conv2d kaiming_normal_(fan_in, relu) -> std = sqrt(2 / (C*3*3)),
    # bias=False; BatchNorm2d gamma=1, beta=0, evaluated with running stats
    # (mean=0, var=1) i.e. inference mode.
    std = math.sqrt(2.0 / (C * 3 * 3))

    def conv_w(k):
        return jax.random.normal(k, (C, C, 3, 3), jnp.float32) * std

    def bn_params():
        return (jnp.ones((C,), jnp.float32), jnp.zeros((C,), jnp.float32),
                jnp.zeros((C,), jnp.float32), jnp.ones((C,), jnp.float32))

    params = {
        "w_down": conv_w(ks[0]), "bn_down": bn_params(),
        "w1": conv_w(ks[1]), "bn1": bn_params(),
        "w2": conv_w(ks[2]), "bn2": bn_params(),
        "wf1": conv_w(ks[3]), "bnf1": bn_params(),
        "wf2": conv_w(ks[4]), "bnf2": bn_params(),
    }

    x_high = jax.random.normal(ks[5], (N, C, Hh, Wh), jnp.float32)
    x_low = jax.random.normal(ks[6], (N, C, Hl, Wl), jnp.float32)

    out = jax.jit(cam_forward)(x_high, x_low, params)
    out = jax.block_until_ready(out)
    assert out.shape == (N, C, Hl, Wl), out.shape
    assert bool(jnp.all(jnp.isfinite(out)))

    ref = jax.block_until_ready(_reference_cam(x_high, x_low, params))
    max_err = float(jnp.max(jnp.abs(out - ref)))
    assert jnp.allclose(out, ref, atol=2e-2, rtol=2e-2), f"mismatch vs reference: {max_err}"

    print("KERNEL_OK")
</pallas_src>

<mosaic_0001>
module attributes {stable_mosaic.version = 11 : i64} {
  func.func @kernel(%arg0: i32, %arg1: memref<1x4x16x90xbf16, #tpu.memory_space<vmem>>, %arg2: memref<9x16x16xbf16, #tpu.memory_space<vmem>>, %arg3: memref<16x1xf32, #tpu.memory_space<vmem>>, %arg4: memref<16x1xf32, #tpu.memory_space<vmem>>, %arg5: memref<1x16x72xf32, #tpu.memory_space<vmem>>) attributes {dimension_semantics = [#tpu.dimension_semantics<parallel>], iteration_bounds = array<i64: 2>, scalar_prefetch = 0 : i64, scratch_operands = 0 : i64, tpu.core_type = #tpu.core_type<tc>, window_params = [{transform_indices = @transform_0, window_bounds = array<i64: 1, 4, 16, 90>}, {pipeline_mode = #tpu.pipeline_mode<synchronous>, transform_indices = @transform_1, window_bounds = array<i64: 9, 16, 16>}, {pipeline_mode = #tpu.pipeline_mode<synchronous>, transform_indices = @transform_2, window_bounds = array<i64: 16, 1>}, {pipeline_mode = #tpu.pipeline_mode<synchronous>, transform_indices = @transform_3, window_bounds = array<i64: 16, 1>}, {transform_indices = @transform_4, window_bounds = array<i64: 1, 16, 72>}]} {
    %c0 = arith.constant 0 : index
    %c0_0 = arith.constant 0 : index
    %c0_1 = arith.constant 0 : index
    %c0_2 = arith.constant 0 : index
    %0 = vector.load %arg1[%c0, %c0_0, %c0_1, %c0_2] : memref<1x4x16x90xbf16, #tpu.memory_space<vmem>>, vector<1x4x16x90xbf16>
    %1 = vector.shape_cast %0 : vector<1x4x16x90xbf16> to vector<4x16x90xbf16>
    %cst = arith.constant 0.000000e+00 : f32
    %2 = vector.broadcast %cst : f32 to vector<16x72xf32>
    %3 = vector.extract_strided_slice %1 {offsets = [0, 0, 0], sizes = [1, 16, 90], strides = [1, 1, 1]} : vector<4x16x90xbf16> to vector<1x16x90xbf16>
    %4 = vector.shape_cast %3 : vector<1x16x90xbf16> to vector<16x90xbf16>
    %5 = vector.extract_strided_slice %4 {offsets = [0, 0], sizes = [16, 72], strides = [1, 1]} : vector<16x90xbf16> to vector<16x72xbf16>
    %c0_3 = arith.constant 0 : index
    %c0_4 = arith.constant 0 : index
    %c0_5 = arith.constant 0 : index
    %6 = vector.load %arg2[%c0_3, %c0_4, %c0_5] : memref<9x16x16xbf16, #tpu.memory_space<vmem>>, vector<1x16x16xbf16>
    %7 = vector.shape_cast %6 : vector<1x16x16xbf16> to vector<16x16xbf16>
    %cst_6 = arith.constant dense<0.000000e+00> : vector<16x72xf32>
    %8 = tpu.matmul %7, %5, %cst_6 {dimension_numbers = #tpu.dot_dimension_numbers<[1], [0], [0], [1], [0, 0, 1, 1], [], []>} : vector<16x16xbf16>, vector<16x72xbf16>, vector<16x72xf32> -> vector<16x72xf32>
    %9 = arith.addf %2, %8 : vector<16x72xf32>
    %10 = vector.extract_strided_slice %1 {offsets = [1, 0, 0], sizes = [1, 16, 90], strides = [1, 1, 1]} : vector<4x16x90xbf16> to vector<1x16x90xbf16>
    %11 = vector.shape_cast %10 : vector<1x16x90xbf16> to vector<16x90xbf16>
    %12 = vector.extract_strided_slice %11 {offsets = [0, 0], sizes = [16, 72], strides = [1, 1]} : vector<16x90xbf16> to vector<16x72xbf16>
    %c1 = arith.constant 1 : index
    %c0_7 = arith.constant 0 : index
    %c0_8 = arith.constant 0 : index
    %13 = vector.load %arg2[%c1, %c0_7, %c0_8] : memref<9x16x16xbf16, #tpu.memory_space<vmem>>, vector<1x16x16xbf16>
    %14 = vector.shape_cast %13 : vector<1x16x16xbf16> to vector<16x16xbf16>
    %cst_9 = arith.constant dense<0.000000e+00> : vector<16x72xf32>
    %15 = tpu.matmul %14, %12, %cst_9 {dimension_numbers = #tpu.dot_dimension_numbers<[1], [0], [0], [1], [0, 0, 1, 1], [], []>} : vector<16x16xbf16>, vector<16x72xbf16>, vector<16x72xf32> -> vector<16x72xf32>
    %16 = arith.addf %9, %15 : vector<16x72xf32>
    %17 = vector.extract_strided_slice %1 {offsets = [0, 0, 0], sizes = [1, 16, 90], strides = [1, 1, 1]} : vector<4x16x90xbf16> to vector<1x16x90xbf16>
    %18 = vector.shape_cast %17 : vector<1x16x90xbf16> to vector<16x90xbf16>
    %19 = vector.extract_strided_slice %18 {offsets = [0, 1], sizes = [16, 72], strides = [1, 1]} : vector<16x90xbf16> to vector<16x72xbf16>
    %c2 = arith.constant 2 : index
    %c0_10 = arith.constant 0 : index
    %c0_11 = arith.constant 0 : index
    %20 = vector.load %arg2[%c2, %c0_10, %c0_11] : memref<9x16x16xbf16, #tpu.memory_space<vmem>>, vector<1x16x16xbf16>
    %21 = vector.shape_cast %20 : vector<1x16x16xbf16> to vector<16x16xbf16>
    %cst_12 = arith.constant dense<0.000000e+00> : vector<16x72xf32>
    %22 = tpu.matmul %21, %19, %cst_12 {dimension_numbers = #tpu.dot_dimension_numbers<[1], [0], [0], [1], [0, 0, 1, 1], [], []>} : vector<16x16xbf16>, vector<16x72xbf16>, vector<16x72xf32> -> vector<16x72xf32>
    %23 = arith.addf %16, %22 : vector<16x72xf32>
    %24 = vector.extract_strided_slice %1 {offsets = [2, 0, 0], sizes = [1, 16, 90], strides = [1, 1, 1]} : vector<4x16x90xbf16> to vector<1x16x90xbf16>
    %25 = vector.shape_cast %24 : vector<1x16x90xbf16> to vector<16x90xbf16>
    %26 = vector.extract_strided_slice %25 {offsets = [0, 0], sizes = [16, 72], strides = [1, 1]} : vector<16x90xbf16> to vector<16x72xbf16>
    %c3 = arith.constant 3 : index
    %c0_13 = arith.constant 0 : index
    %c0_14 = arith.constant 0 : index
    %27 = vector.load %arg2[%c3, %c0_13, %c0_14] : memref<9x16x16xbf16, #tpu.memory_space<vmem>>, vector<1x16x16xbf16>
    %28 = vector.shape_cast %27 : vector<1x16x16xbf16> to vector<16x16xbf16>
    %cst_15 = arith.constant dense<0.000000e+00> : vector<16x72xf32>
    %29 = tpu.matmul %28, %26, %cst_15 {dimension_numbers = #tpu.dot_dimension_numbers<[1], [0], [0], [1], [0, 0, 1, 1], [], []>} : vector<16x16xbf16>, vector<16x72xbf16>, vector<16x72xf32> -> vector<16x72xf32>
    %30 = arith.addf %23, %29 : vector<16x72xf32>
    %31 = vector.extract_strided_slice %1 {offsets = [3, 0, 0], sizes = [1, 16, 90], strides = [1, 1, 1]} : vector<4x16x90xbf16> to vector<1x16x90xbf16>
    %32 = vector.shape_cast %31 : vector<1x16x90xbf16> to vector<16x90xbf16>
    %33 = vector.extract_strided_slice %32 {offsets = [0, 0], sizes = [16, 72], strides = [1, 1]} : vector<16x90xbf16> to vector<16x72xbf16>
    %c4 = arith.constant 4 : index
    %c0_16 = arith.constant 0 : index
    %c0_17 = arith.constant 0 : index
    %34 = vector.load %arg2[%c4, %c0_16, %c0_17] : memref<9x16x16xbf16, #tpu.memory_space<vmem>>, vector<1x16x16xbf16>
    %35 = vector.shape_cast %34 : vector<1x16x16xbf16> to vector<16x16xbf16>
    %cst_18 = arith.constant dense<0.000000e+00> : vector<16x72xf32>
    %36 = tpu.matmul %35, %33, %cst_18 {dimension_numbers = #tpu.dot_dimension_numbers<[1], [0], [0], [1], [0, 0, 1, 1], [], []>} : vector<16x16xbf16>, vector<16x72xbf16>, vector<16x72xf32> -> vector<16x72xf32>
    %37 = arith.addf %30, %36 : vector<16x72xf32>
    %38 = vector.extract_strided_slice %1 {offsets = [2, 0, 0], sizes = [1, 16, 90], strides = [1, 1, 1]} : vector<4x16x90xbf16> to vector<1x16x90xbf16>
    %39 = vector.shape_cast %38 : vector<1x16x90xbf16> to vector<16x90xbf16>
    %40 = vector.extract_strided_slice %39 {offsets = [0, 1], sizes = [16, 72], strides = [1, 1]} : vector<16x90xbf16> to vector<16x72xbf16>
    %c5 = arith.constant 5 : index
    %c0_19 = arith.constant 0 : index
    %c0_20 = arith.constant 0 : index
    %41 = vector.load %arg2[%c5, %c0_19, %c0_20] : memref<9x16x16xbf16, #tpu.memory_space<vmem>>, vector<1x16x16xbf16>
    %42 = vector.shape_cast %41 : vector<1x16x16xbf16> to vector<16x16xbf16>
    %cst_21 = arith.constant dense<0.000000e+00> : vector<16x72xf32>
    %43 = tpu.matmul %42, %40, %cst_21 {dimension_numbers = #tpu.dot_dimension_numbers<[1], [0], [0], [1], [0, 0, 1, 1], [], []>} : vector<16x16xbf16>, vector<16x72xbf16>, vector<16x72xf32> -> vector<16x72xf32>
    %44 = arith.addf %37, %43 : vector<16x72xf32>
    %45 = vector.extract_strided_slice %1 {offsets = [0, 0, 0], sizes = [1, 16, 90], strides = [1, 1, 1]} : vector<4x16x90xbf16> to vector<1x16x90xbf16>
    %46 = vector.shape_cast %45 : vector<1x16x90xbf16> to vector<16x90xbf16>
    %47 = vector.extract_strided_slice %46 {offsets = [0, 9], sizes = [16, 72], strides = [1, 1]} : vector<16x90xbf16> to vector<16x72xbf16>
    %c6 = arith.constant 6 : index
    %c0_22 = arith.constant 0 : index
    %c0_23 = arith.constant 0 : index
    %48 = vector.load %arg2[%c6, %c0_22, %c0_23] : memref<9x16x16xbf16, #tpu.memory_space<vmem>>, vector<1x16x16xbf16>
    %49 = vector.shape_cast %48 : vector<1x16x16xbf16> to vector<16x16xbf16>
    %cst_24 = arith.constant dense<0.000000e+00> : vector<16x72xf32>
    %50 = tpu.matmul %49, %47, %cst_24 {dimension_numbers = #tpu.dot_dimension_numbers<[1], [0], [0], [1], [0, 0, 1, 1], [], []>} : vector<16x16xbf16>, vector<16x72xbf16>, vector<16x72xf32> -> vector<16x72xf32>
    %51 = arith.addf %44, %50 : vector<16x72xf32>
    %52 = vector.extract_strided_slice %1 {offsets = [1, 0, 0], sizes = [1, 16, 90], strides = [1, 1, 1]} : vector<4x16x90xbf16> to vector<1x16x90xbf16>
    %53 = vector.shape_cast %52 : vector<1x16x90xbf16> to vector<16x90xbf16>
    %54 = vector.extract_strided_slice %53 {offsets = [0, 9], sizes = [16, 72], strides = [1, 1]} : vector<16x90xbf16> to vector<16x72xbf16>
    %c7 = arith.constant 7 : index
    %c0_25 = arith.constant 0 : index
    %c0_26 = arith.constant 0 : index
    %55 = vector.load %arg2[%c7, %c0_25, %c0_26] : memref<9x16x16xbf16, #tpu.memory_space<vmem>>, vector<1x16x16xbf16>
    %56 = vector.shape_cast %55 : vector<1x16x16xbf16> to vector<16x16xbf16>
    %cst_27 = arith.constant dense<0.000000e+00> : vector<16x72xf32>
    %57 = tpu.matmul %56, %54, %cst_27 {dimension_numbers = #tpu.dot_dimension_numbers<[1], [0], [0], [1], [0, 0, 1, 1], [], []>} : vector<16x16xbf16>, vector<16x72xbf16>, vector<16x72xf32> -> vector<16x72xf32>
    %58 = arith.addf %51, %57 : vector<16x72xf32>
    %59 = vector.extract_strided_slice %1 {offsets = [0, 0, 0], sizes = [1, 16, 90], strides = [1, 1, 1]} : vector<4x16x90xbf16> to vector<1x16x90xbf16>
    %60 = vector.shape_cast %59 : vector<1x16x90xbf16> to vector<16x90xbf16>
    %61 = vector.extract_strided_slice %60 {offsets = [0, 10], sizes = [16, 72], strides = [1, 1]} : vector<16x90xbf16> to vector<16x72xbf16>
    %c8 = arith.constant 8 : index
    %c0_28 = arith.constant 0 : index
    %c0_29 = arith.constant 0 : index
    %62 = vector.load %arg2[%c8, %c0_28, %c0_29] : memref<9x16x16xbf16, #tpu.memory_space<vmem>>, vector<1x16x16xbf16>
    %63 = vector.shape_cast %62 : vector<1x16x16xbf16> to vector<16x16xbf16>
    %cst_30 = arith.constant dense<0.000000e+00> : vector<16x72xf32>
    %64 = tpu.matmul %63, %61, %cst_30 {dimension_numbers = #tpu.dot_dimension_numbers<[1], [0], [0], [1], [0, 0, 1, 1], [], []>} : vector<16x16xbf16>, vector<16x72xbf16>, vector<16x72xf32> -> vector<16x72xf32>
    %65 = arith.addf %58, %64 : vector<16x72xf32>
    %c0_31 = arith.constant 0 : index
    %c0_32 = arith.constant 0 : index
    %66 = vector.load %arg3[%c0_31, %c0_32] : memref<16x1xf32, #tpu.memory_space<vmem>>, vector<16x1xf32>
    %67 = vector.broadcast %66 : vector<16x1xf32> to vector<16x72xf32>
    %68 = arith.mulf %65, %67 : vector<16x72xf32>
    %c0_33 = arith.constant 0 : index
    %c0_34 = arith.constant 0 : index
    %69 = vector.load %arg4[%c0_33, %c0_34] : memref<16x1xf32, #tpu.memory_space<vmem>>, vector<16x1xf32>
    %70 = vector.broadcast %69 : vector<16x1xf32> to vector<16x72xf32>
    %71 = arith.addf %68, %70 : vector<16x72xf32>
    %cst_35 = arith.constant 0.000000e+00 : f32
    %72 = vector.broadcast %cst_35 : f32 to vector<16x72xf32>
    %73 = arith.maximumf %71, %72 : vector<16x72xf32>
    %c0_36 = arith.constant 0 : index
    %c0_37 = arith.constant 0 : index
    %c0_38 = arith.constant 0 : index
    %74 = vector.load %arg5[%c0_36, %c0_37, %c0_38] : memref<1x16x72xf32, #tpu.memory_space<vmem>>, vector<1x16x72xf32>
    %75 = vector.shape_cast %74 : vector<1x16x72xf32> to vector<16x72xf32>
    %76 = vector.shape_cast %73 : vector<16x72xf32> to vector<1x16x72xf32>
    tpu.vector_store %arg5[%c0_36, %c0_37, %c0_38], %76 {strides = array<i32>} : memref<1x16x72xf32, #tpu.memory_space<vmem>>, vector<1x16x72xf32>,
    return
  }
  func.func @transform_0(%arg0: i32) -> (i32, i32, i32, i32) {
    %c0_i32 = arith.constant 0 : i32
    %c0_i32_0 = arith.constant 0 : i32
    %c0_i32_1 = arith.constant 0 : i32
    %c0_i32_2 = arith.constant 0 : i32
    return %arg0, %c0_i32, %c0_i32_0, %c0_i32_1 : i32, i32, i32, i32
  }
  func.func @transform_1(%arg0: i32) -> (i32, i32, i32) {
    %c0_i32 = arith.constant 0 : i32
    %c0_i32_0 = arith.constant 0 : i32
    %c0_i32_1 = arith.constant 0 : i32
    %c0_i32_2 = arith.constant 0 : i32
    return %c0_i32, %c0_i32_0, %c0_i32_1 : i32, i32, i32
  }
  func.func @transform_2(%arg0: i32) -> (i32, i32) {
    %c0_i32 = arith.constant 0 : i32
    %c0_i32_0 = arith.constant 0 : i32
    %c0_i32_1 = arith.constant 0 : i32
    return %c0_i32, %c0_i32_0 : i32, i32
  }
  func.func @transform_3(%arg0: i32) -> (i32, i32) {
    %c0_i32 = arith.constant 0 : i32
    %c0_i32_0 = arith.constant 0 : i32
    %c0_i32_1 = arith.constant 0 : i32
    return %c0_i32, %c0_i32_0 : i32, i32
  }
  func.func @transform_4(%arg0: i32) -> (i32, i32, i32) {
    %c0_i32 = arith.constant 0 : i32
    %c0_i32_0 = arith.constant 0 : i32
    %c0_i32_1 = arith.constant 0 : i32
    return %arg0, %c0_i32, %c0_i32_0 : i32, i32, i32
  }
}

module attributes {stable_mosaic.version = 11 : i64} {
  func.func @kernel(%arg0: i32, %arg1: memref<1x16x110xbf16, #tpu.memory_space<vmem>>, %arg2: memref<1x16x110xbf16, #tpu.memory_space<vmem>>, %arg3: memref<9x16x16xbf16, #tpu.memory_space<vmem>>, %arg4: memref<16x1xf32, #tpu.memory_space<vmem>>, %arg5: memref<16x1xf32, #tpu.memory_space<vmem>>, %arg6: memref<1x16x80xf32, #tpu.memory_space<vmem>>) attributes {dimension_semantics = [#tpu.dimension_semantics<parallel>], iteration_bounds = array<i64: 2>, scalar_prefetch = 0 : i64, scratch_operands = 0 : i64, tpu.core_type = #tpu.core_type<tc>, window_params = [{transform_indices = @transform_0, window_bounds = array<i64: 1, 16, 110>}, {transform_indices = @transform_1, window_bounds = array<i64: 1, 16, 110>}, {pipeline_mode = #tpu.pipeline_mode<synchronous>, transform_indices = @transform_2, window_bounds = array<i64: 9, 16, 16>}, {pipeline_mode = #tpu.pipeline_mode<synchronous>, transform_indices = @transform_3, window_bounds = array<i64: 16, 1>}, {pipeline_mode = #tpu.pipeline_mode<synchronous>, transform_indices = @transform_4, window_bounds = array<i64: 16, 1>}, {transform_indices = @transform_5, window_bounds = array<i64: 1, 16, 80>}]} {
    %c0 = arith.constant 0 : index
    %c0_0 = arith.constant 0 : index
    %c0_1 = arith.constant 0 : index
    %0 = vector.load %arg1[%c0, %c0_0, %c0_1] : memref<1x16x110xbf16, #tpu.memory_space<vmem>>, vector<1x16x110xbf16>
    %1 = vector.shape_cast %0 : vector<1x16x110xbf16> to vector<16x110xbf16>
    %2 = arith.extf %1 : vector<16x110xbf16> to vector<16x110xf32>
    %c0_2 = arith.constant 0 : index
    %c0_3 = arith.constant 0 : index
    %c0_4 = arith.constant 0 : index
    %3 = vector.load %arg2[%c0_2, %c0_3, %c0_4] : memref<1x16x110xbf16, #tpu.memory_space<vmem>>, vector<1x16x110xbf16>
    %4 = vector.shape_cast %3 : vector<1x16x110xbf16> to vector<16x110xbf16>
    %5 = arith.extf %4 : vector<16x110xbf16> to vector<16x110xf32>
    %6 = arith.mulf %2, %5 : vector<16x110xf32>
    %7 = arith.truncf %6 : vector<16x110xf32> to vector<16x110xbf16>
    %cst = arith.constant 0.000000e+00 : f32
    %8 = vector.broadcast %cst : f32 to vector<16x80xf32>
    %9 = vector.extract_strided_slice %7 {offsets = [0, 0], sizes = [16, 80], strides = [1, 1]} : vector<16x110xbf16> to vector<16x80xbf16>
    %c0_5 = arith.constant 0 : index
    %c0_6 = arith.constant 0 : index
    %c0_7 = arith.constant 0 : index
    %10 = vector.load %arg3[%c0_5, %c0_6, %c0_7] : memref<9x16x16xbf16, #tpu.memory_space<vmem>>, vector<1x16x16xbf16>
    %11 = vector.shape_cast %10 : vector<1x16x16xbf16> to vector<16x16xbf16>
    %cst_8 = arith.constant dense<0.000000e+00> : vector<16x80xf32>
    %12 = tpu.matmul %11, %9, %cst_8 {dimension_numbers = #tpu.dot_dimension_numbers<[1], [0], [0], [1], [0, 0, 1, 1], [], []>} : vector<16x16xbf16>, vector<16x80xbf16>, vector<16x80xf32> -> vector<16x80xf32>
    %13 = arith.addf %8, %12 : vector<16x80xf32>
    %14 = vector.extract_strided_slice %7 {offsets = [0, 1], sizes = [16, 80], strides = [1, 1]} : vector<16x110xbf16> to vector<16x80xbf16>
    %c1 = arith.constant 1 : index
    %c0_9 = arith.constant 0 : index
    %c0_10 = arith.constant 0 : index
    %15 = vector.load %arg3[%c1, %c0_9, %c0_10] : memref<9x16x16xbf16, #tpu.memory_space<vmem>>, vector<1x16x16xbf16>
    %16 = vector.shape_cast %15 : vector<1x16x16xbf16> to vector<16x16xbf16>
    %cst_11 = arith.constant dense<0.000000e+00> : vector<16x80xf32>
    %17 = tpu.matmul %16, %14, %cst_11 {dimension_numbers = #tpu.dot_dimension_numbers<[1], [0], [0], [1], [0, 0, 1, 1], [], []>} : vector<16x16xbf16>, vector<16x80xbf16>, vector<16x80xf32> -> vector<16x80xf32>
    %18 = arith.addf %13, %17 : vector<16x80xf32>
    %19 = vector.extract_strided_slice %7 {offsets = [0, 2], sizes = [16, 80], strides = [1, 1]} : vector<16x110xbf16> to vector<16x80xbf16>
    %c2 = arith.constant 2 : index
    %c0_12 = arith.constant 0 : index
    %c0_13 = arith.constant 0 : index
    %20 = vector.load %arg3[%c2, %c0_12, %c0_13] : memref<9x16x16xbf16, #tpu.memory_space<vmem>>, vector<1x16x16xbf16>
    %21 = vector.shape_cast %20 : vector<1x16x16xbf16> to vector<16x16xbf16>
    %cst_14 = arith.constant dense<0.000000e+00> : vector<16x80xf32>
    %22 = tpu.matmul %21, %19, %cst_14 {dimension_numbers = #tpu.dot_dimension_numbers<[1], [0], [0], [1], [0, 0, 1, 1], [], []>} : vector<16x16xbf16>, vector<16x80xbf16>, vector<16x80xf32> -> vector<16x80xf32>
    %23 = arith.addf %18, %22 : vector<16x80xf32>
    %24 = vector.extract_strided_slice %7 {offsets = [0, 10], sizes = [16, 80], strides = [1, 1]} : vector<16x110xbf16> to vector<16x80xbf16>
    %c3 = arith.constant 3 : index
    %c0_15 = arith.constant 0 : index
    %c0_16 = arith.constant 0 : index
    %25 = vector.load %arg3[%c3, %c0_15, %c0_16] : memref<9x16x16xbf16, #tpu.memory_space<vmem>>, vector<1x16x16xbf16>
    %26 = vector.shape_cast %25 : vector<1x16x16xbf16> to vector<16x16xbf16>
    %cst_17 = arith.constant dense<0.000000e+00> : vector<16x80xf32>
    %27 = tpu.matmul %26, %24, %cst_17 {dimension_numbers = #tpu.dot_dimension_numbers<[1], [0], [0], [1], [0, 0, 1, 1], [], []>} : vector<16x16xbf16>, vector<16x80xbf16>, vector<16x80xf32> -> vector<16x80xf32>
    %28 = arith.addf %23, %27 : vector<16x80xf32>
    %29 = vector.extract_strided_slice %7 {offsets = [0, 11], sizes = [16, 80], strides = [1, 1]} : vector<16x110xbf16> to vector<16x80xbf16>
    %c4 = arith.constant 4 : index
    %c0_18 = arith.constant 0 : index
    %c0_19 = arith.constant 0 : index
    %30 = vector.load %arg3[%c4, %c0_18, %c0_19] : memref<9x16x16xbf16, #tpu.memory_space<vmem>>, vector<1x16x16xbf16>
    %31 = vector.shape_cast %30 : vector<1x16x16xbf16> to vector<16x16xbf16>
    %cst_20 = arith.constant dense<0.000000e+00> : vector<16x80xf32>
    %32 = tpu.matmul %31, %29, %cst_20 {dimension_numbers = #tpu.dot_dimension_numbers<[1], [0], [0], [1], [0, 0, 1, 1], [], []>} : vector<16x16xbf16>, vector<16x80xbf16>, vector<16x80xf32> -> vector<16x80xf32>
    %33 = arith.addf %28, %32 : vector<16x80xf32>
    %34 = vector.extract_strided_slice %7 {offsets = [0, 12], sizes = [16, 80], strides = [1, 1]} : vector<16x110xbf16> to vector<16x80xbf16>
    %c5 = arith.constant 5 : index
    %c0_21 = arith.constant 0 : index
    %c0_22 = arith.constant 0 : index
    %35 = vector.load %arg3[%c5, %c0_21, %c0_22] : memref<9x16x16xbf16, #tpu.memory_space<vmem>>, vector<1x16x16xbf16>
    %36 = vector.shape_cast %35 : vector<1x16x16xbf16> to vector<16x16xbf16>
    %cst_23 = arith.constant dense<0.000000e+00> : vector<16x80xf32>
    %37 = tpu.matmul %36, %34, %cst_23 {dimension_numbers = #tpu.dot_dimension_numbers<[1], [0], [0], [1], [0, 0, 1, 1], [], []>} : vector<16x16xbf16>, vector<16x80xbf16>, vector<16x80xf32> -> vector<16x80xf32>
    %38 = arith.addf %33, %37 : vector<16x80xf32>
    %39 = vector.extract_strided_slice %7 {offsets = [0, 20], sizes = [16, 80], strides = [1, 1]} : vector<16x110xbf16> to vector<16x80xbf16>
    %c6 = arith.constant 6 : index
    %c0_24 = arith.constant 0 : index
    %c0_25 = arith.constant 0 : index
    %40 = vector.load %arg3[%c6, %c0_24, %c0_25] : memref<9x16x16xbf16, #tpu.memory_space<vmem>>, vector<1x16x16xbf16>
    %41 = vector.shape_cast %40 : vector<1x16x16xbf16> to vector<16x16xbf16>
    %cst_26 = arith.constant dense<0.000000e+00> : vector<16x80xf32>
    %42 = tpu.matmul %41, %39, %cst_26 {dimension_numbers = #tpu.dot_dimension_numbers<[1], [0], [0], [1], [0, 0, 1, 1], [], []>} : vector<16x16xbf16>, vector<16x80xbf16>, vector<16x80xf32> -> vector<16x80xf32>
    %43 = arith.addf %38, %42 : vector<16x80xf32>
    %44 = vector.extract_strided_slice %7 {offsets = [0, 21], sizes = [16, 80], strides = [1, 1]} : vector<16x110xbf16> to vector<16x80xbf16>
    %c7 = arith.constant 7 : index
    %c0_27 = arith.constant 0 : index
    %c0_28 = arith.constant 0 : index
    %45 = vector.load %arg3[%c7, %c0_27, %c0_28] : memref<9x16x16xbf16, #tpu.memory_space<vmem>>, vector<1x16x16xbf16>
    %46 = vector.shape_cast %45 : vector<1x16x16xbf16> to vector<16x16xbf16>
    %cst_29 = arith.constant dense<0.000000e+00> : vector<16x80xf32>
    %47 = tpu.matmul %46, %44, %cst_29 {dimension_numbers = #tpu.dot_dimension_numbers<[1], [0], [0], [1], [0, 0, 1, 1], [], []>} : vector<16x16xbf16>, vector<16x80xbf16>, vector<16x80xf32> -> vector<16x80xf32>
    %48 = arith.addf %43, %47 : vector<16x80xf32>
    %49 = vector.extract_strided_slice %7 {offsets = [0, 22], sizes = [16, 80], strides = [1, 1]} : vector<16x110xbf16> to vector<16x80xbf16>
    %c8 = arith.constant 8 : index
    %c0_30 = arith.constant 0 : index
    %c0_31 = arith.constant 0 : index
    %50 = vector.load %arg3[%c8, %c0_30, %c0_31] : memref<9x16x16xbf16, #tpu.memory_space<vmem>>, vector<1x16x16xbf16>
    %51 = vector.shape_cast %50 : vector<1x16x16xbf16> to vector<16x16xbf16>
    %cst_32 = arith.constant dense<0.000000e+00> : vector<16x80xf32>
    %52 = tpu.matmul %51, %49, %cst_32 {dimension_numbers = #tpu.dot_dimension_numbers<[1], [0], [0], [1], [0, 0, 1, 1], [], []>} : vector<16x16xbf16>, vector<16x80xbf16>, vector<16x80xf32> -> vector<16x80xf32>
    %53 = arith.addf %48, %52 : vector<16x80xf32>
    %c0_33 = arith.constant 0 : index
    %c0_34 = arith.constant 0 : index
    %54 = vector.load %arg4[%c0_33, %c0_34] : memref<16x1xf32, #tpu.memory_space<vmem>>, vector<16x1xf32>
    %55 = vector.broadcast %54 : vector<16x1xf32> to vector<16x80xf32>
    %56 = arith.mulf %53, %55 : vector<16x80xf32>
    %c0_35 = arith.constant 0 : index
    %c0_36 = arith.constant 0 : index
    %57 = vector.load %arg5[%c0_35, %c0_36] : memref<16x1xf32, #tpu.memory_space<vmem>>, vector<16x1xf32>
    %58 = vector.broadcast %57 : vector<16x1xf32> to vector<16x80xf32>
    %59 = arith.addf %56, %58 : vector<16x80xf32>
    %cst_37 = arith.constant 0.000000e+00 : f32
    %60 = vector.broadcast %cst_37 : f32 to vector<16x80xf32>
    %61 = arith.maximumf %59, %60 : vector<16x80xf32>
    %c0_38 = arith.constant 0 : index
    %c0_39 = arith.constant 0 : index
    %c0_40 = arith.constant 0 : index
    %62 = vector.load %arg6[%c0_38, %c0_39, %c0_40] : memref<1x16x80xf32, #tpu.memory_space<vmem>>, vector<1x16x80xf32>
    %63 = vector.shape_cast %62 : vector<1x16x80xf32> to vector<16x80xf32>
    %64 = vector.shape_cast %61 : vector<16x80xf32> to vector<1x16x80xf32>
    tpu.vector_store %arg6[%c0_38, %c0_39, %c0_40], %64 {strides = array<i32>} : memref<1x16x80xf32, #tpu.memory_space<vmem>>, vector<1x16x80xf32>,
    return
  }
  func.func @transform_0(%arg0: i32) -> (i32, i32, i32) {
    %c0_i32 = arith.constant 0 : i32
    %c0_i32_0 = arith.constant 0 : i32
    %c0_i32_1 = arith.constant 0 : i32
    return %arg0, %c0_i32, %c0_i32_0 : i32, i32, i32
  }
  func.func @transform_1(%arg0: i32) -> (i32, i32, i32) {
    %c0_i32 = arith.constant 0 : i32
    %c0_i32_0 = arith.constant 0 : i32
    %c0_i32_1 = arith.constant 0 : i32
    return %arg0, %c0_i32, %c0_i32_0 : i32, i32, i32
  }
  func.func @transform_2(%arg0: i32) -> (i32, i32, i32) {
    %c0_i32 = arith.constant 0 : i32
    %c0_i32_0 = arith.constant 0 : i32
    %c0_i32_1 = arith.constant 0 : i32
    %c0_i32_2 = arith.constant 0 : i32
    return %c0_i32, %c0_i32_0, %c0_i32_1 : i32, i32, i32
  }
  func.func @transform_3(%arg0: i32) -> (i32, i32) {
    %c0_i32 = arith.constant 0 : i32
    %c0_i32_0 = arith.constant 0 : i32
    %c0_i32_1 = arith.constant 0 : i32
    return %c0_i32, %c0_i32_0 : i32, i32
  }
  func.func @transform_4(%arg0: i32) -> (i32, i32) {
    %c0_i32 = arith.constant 0 : i32
    %c0_i32_0 = arith.constant 0 : i32
    %c0_i32_1 = arith.constant 0 : i32
    return %c0_i32, %c0_i32_0 : i32, i32
  }
  func.func @transform_5(%arg0: i32) -> (i32, i32, i32) {
    %c0_i32 = arith.constant 0 : i32
    %c0_i32_0 = arith.constant 0 : i32
    %c0_i32_1 = arith.constant 0 : i32
    return %arg0, %c0_i32, %c0_i32_0 : i32, i32, i32
  }
}

module attributes {stable_mosaic.version = 11 : i64} {
  func.func @kernel(%arg0: i32, %arg1: memref<1x16x342xbf16, #tpu.memory_space<vmem>>, %arg2: memref<1x16x342xbf16, #tpu.memory_space<vmem>>, %arg3: memref<9x16x16xbf16, #tpu.memory_space<vmem>>, %arg4: memref<16x1xf32, #tpu.memory_space<vmem>>, %arg5: memref<16x1xf32, #tpu.memory_space<vmem>>, %arg6: memref<1x16x288xf32, #tpu.memory_space<vmem>>) attributes {dimension_semantics = [#tpu.dimension_semantics<parallel>], iteration_bounds = array<i64: 2>, scalar_prefetch = 0 : i64, scratch_operands = 0 : i64, tpu.core_type = #tpu.core_type<tc>, window_params = [{transform_indices = @transform_0, window_bounds = array<i64: 1, 16, 342>}, {transform_indices = @transform_1, window_bounds = array<i64: 1, 16, 342>}, {pipeline_mode = #tpu.pipeline_mode<synchronous>, transform_indices = @transform_2, window_bounds = array<i64: 9, 16, 16>}, {pipeline_mode = #tpu.pipeline_mode<synchronous>, transform_indices = @transform_3, window_bounds = array<i64: 16, 1>}, {pipeline_mode = #tpu.pipeline_mode<synchronous>, transform_indices = @transform_4, window_bounds = array<i64: 16, 1>}, {transform_indices = @transform_5, window_bounds = array<i64: 1, 16, 288>}]} {
    %c0 = arith.constant 0 : index
    %c0_0 = arith.constant 0 : index
    %c0_1 = arith.constant 0 : index
    %0 = vector.load %arg1[%c0, %c0_0, %c0_1] : memref<1x16x342xbf16, #tpu.memory_space<vmem>>, vector<1x16x342xbf16>
    %1 = vector.shape_cast %0 : vector<1x16x342xbf16> to vector<16x342xbf16>
    %2 = arith.extf %1 : vector<16x342xbf16> to vector<16x342xf32>
    %c0_2 = arith.constant 0 : index
    %c0_3 = arith.constant 0 : index
    %c0_4 = arith.constant 0 : index
    %3 = vector.load %arg2[%c0_2, %c0_3, %c0_4] : memref<1x16x342xbf16, #tpu.memory_space<vmem>>, vector<1x16x342xbf16>
    %4 = vector.shape_cast %3 : vector<1x16x342xbf16> to vector<16x342xbf16>
    %5 = arith.extf %4 : vector<16x342xbf16> to vector<16x342xf32>
    %6 = arith.mulf %2, %5 : vector<16x342xf32>
    %7 = arith.truncf %6 : vector<16x342xf32> to vector<16x342xbf16>
    %cst = arith.constant 0.000000e+00 : f32
    %8 = vector.broadcast %cst : f32 to vector<16x288xf32>
    %9 = vector.extract_strided_slice %7 {offsets = [0, 0], sizes = [16, 288], strides = [1, 1]} : vector<16x342xbf16> to vector<16x288xbf16>
    %c0_5 = arith.constant 0 : index
    %c0_6 = arith.constant 0 : index
    %c0_7 = arith.constant 0 : index
    %10 = vector.load %arg3[%c0_5, %c0_6, %c0_7] : memref<9x16x16xbf16, #tpu.memory_space<vmem>>, vector<1x16x16xbf16>
    %11 = vector.shape_cast %10 : vector<1x16x16xbf16> to vector<16x16xbf16>
    %cst_8 = arith.constant dense<0.000000e+00> : vector<16x288xf32>
    %12 = tpu.matmul %11, %9, %cst_8 {dimension_numbers = #tpu.dot_dimension_numbers<[1], [0], [0], [1], [0, 0, 1, 1], [], []>} : vector<16x16xbf16>, vector<16x288xbf16>, vector<16x288xf32> -> vector<16x288xf32>
    %13 = arith.addf %8, %12 : vector<16x288xf32>
    %14 = vector.extract_strided_slice %7 {offsets = [0, 1], sizes = [16, 288], strides = [1, 1]} : vector<16x342xbf16> to vector<16x288xbf16>
    %c1 = arith.constant 1 : index
    %c0_9 = arith.constant 0 : index
    %c0_10 = arith.constant 0 : index
    %15 = vector.load %arg3[%c1, %c0_9, %c0_10] : memref<9x16x16xbf16, #tpu.memory_space<vmem>>, vector<1x16x16xbf16>
    %16 = vector.shape_cast %15 : vector<1x16x16xbf16> to vector<16x16xbf16>
    %cst_11 = arith.constant dense<0.000000e+00> : vector<16x288xf32>
    %17 = tpu.matmul %16, %14, %cst_11 {dimension_numbers = #tpu.dot_dimension_numbers<[1], [0], [0], [1], [0, 0, 1, 1], [], []>} : vector<16x16xbf16>, vector<16x288xbf16>, vector<16x288xf32> -> vector<16x288xf32>
    %18 = arith.addf %13, %17 : vector<16x288xf32>
    %19 = vector.extract_strided_slice %7 {offsets = [0, 2], sizes = [16, 288], strides = [1, 1]} : vector<16x342xbf16> to vector<16x288xbf16>
    %c2 = arith.constant 2 : index
    %c0_12 = arith.constant 0 : index
    %c0_13 = arith.constant 0 : index
    %20 = vector.load %arg3[%c2, %c0_12, %c0_13] : memref<9x16x16xbf16, #tpu.memory_space<vmem>>, vector<1x16x16xbf16>
    %21 = vector.shape_cast %20 : vector<1x16x16xbf16> to vector<16x16xbf16>
    %cst_14 = arith.constant dense<0.000000e+00> : vector<16x288xf32>
    %22 = tpu.matmul %21, %19, %cst_14 {dimension_numbers = #tpu.dot_dimension_numbers<[1], [0], [0], [1], [0, 0, 1, 1], [], []>} : vector<16x16xbf16>, vector<16x288xbf16>, vector<16x288xf32> -> vector<16x288xf32>
    %23 = arith.addf %18, %22 : vector<16x288xf32>
    %24 = vector.extract_strided_slice %7 {offsets = [0, 18], sizes = [16, 288], strides = [1, 1]} : vector<16x342xbf16> to vector<16x288xbf16>
    %c3 = arith.constant 3 : index
    %c0_15 = arith.constant 0 : index
    %c0_16 = arith.constant 0 : index
    %25 = vector.load %arg3[%c3, %c0_15, %c0_16] : memref<9x16x16xbf16, #tpu.memory_space<vmem>>, vector<1x16x16xbf16>
    %26 = vector.shape_cast %25 : vector<1x16x16xbf16> to vector<16x16xbf16>
    %cst_17 = arith.constant dense<0.000000e+00> : vector<16x288xf32>
    %27 = tpu.matmul %26, %24, %cst_17 {dimension_numbers = #tpu.dot_dimension_numbers<[1], [0], [0], [1], [0, 0, 1, 1], [], []>} : vector<16x16xbf16>, vector<16x288xbf16>, vector<16x288xf32> -> vector<16x288xf32>
    %28 = arith.addf %23, %27 : vector<16x288xf32>
    %29 = vector.extract_strided_slice %7 {offsets = [0, 19], sizes = [16, 288], strides = [1, 1]} : vector<16x342xbf16> to vector<16x288xbf16>
    %c4 = arith.constant 4 : index
    %c0_18 = arith.constant 0 : index
    %c0_19 = arith.constant 0 : index
    %30 = vector.load %arg3[%c4, %c0_18, %c0_19] : memref<9x16x16xbf16, #tpu.memory_space<vmem>>, vector<1x16x16xbf16>
    %31 = vector.shape_cast %30 : vector<1x16x16xbf16> to vector<16x16xbf16>
    %cst_20 = arith.constant dense<0.000000e+00> : vector<16x288xf32>
    %32 = tpu.matmul %31, %29, %cst_20 {dimension_numbers = #tpu.dot_dimension_numbers<[1], [0], [0], [1], [0, 0, 1, 1], [], []>} : vector<16x16xbf16>, vector<16x288xbf16>, vector<16x288xf32> -> vector<16x288xf32>
    %33 = arith.addf %28, %32 : vector<16x288xf32>
    %34 = vector.extract_strided_slice %7 {offsets = [0, 20], sizes = [16, 288], strides = [1, 1]} : vector<16x342xbf16> to vector<16x288xbf16>
    %c5 = arith.constant 5 : index
    %c0_21 = arith.constant 0 : index
    %c0_22 = arith.constant 0 : index
    %35 = vector.load %arg3[%c5, %c0_21, %c0_22] : memref<9x16x16xbf16, #tpu.memory_space<vmem>>, vector<1x16x16xbf16>
    %36 = vector.shape_cast %35 : vector<1x16x16xbf16> to vector<16x16xbf16>
    %cst_23 = arith.constant dense<0.000000e+00> : vector<16x288xf32>
    %37 = tpu.matmul %36, %34, %cst_23 {dimension_numbers = #tpu.dot_dimension_numbers<[1], [0], [0], [1], [0, 0, 1, 1], [], []>} : vector<16x16xbf16>, vector<16x288xbf16>, vector<16x288xf32> -> vector<16x288xf32>
    %38 = arith.addf %33, %37 : vector<16x288xf32>
    %39 = vector.extract_strided_slice %7 {offsets = [0, 36], sizes = [16, 288], strides = [1, 1]} : vector<16x342xbf16> to vector<16x288xbf16>
    %c6 = arith.constant 6 : index
    %c0_24 = arith.constant 0 : index
    %c0_25 = arith.constant 0 : index
    %40 = vector.load %arg3[%c6, %c0_24, %c0_25] : memref<9x16x16xbf16, #tpu.memory_space<vmem>>, vector<1x16x16xbf16>
    %41 = vector.shape_cast %40 : vector<1x16x16xbf16> to vector<16x16xbf16>
    %cst_26 = arith.constant dense<0.000000e+00> : vector<16x288xf32>
    %42 = tpu.matmul %41, %39, %cst_26 {dimension_numbers = #tpu.dot_dimension_numbers<[1], [0], [0], [1], [0, 0, 1, 1], [], []>} : vector<16x16xbf16>, vector<16x288xbf16>, vector<16x288xf32> -> vector<16x288xf32>
    %43 = arith.addf %38, %42 : vector<16x288xf32>
    %44 = vector.extract_strided_slice %7 {offsets = [0, 37], sizes = [16, 288], strides = [1, 1]} : vector<16x342xbf16> to vector<16x288xbf16>
    %c7 = arith.constant 7 : index
    %c0_27 = arith.constant 0 : index
    %c0_28 = arith.constant 0 : index
    %45 = vector.load %arg3[%c7, %c0_27, %c0_28] : memref<9x16x16xbf16, #tpu.memory_space<vmem>>, vector<1x16x16xbf16>
    %46 = vector.shape_cast %45 : vector<1x16x16xbf16> to vector<16x16xbf16>
    %cst_29 = arith.constant dense<0.000000e+00> : vector<16x288xf32>
    %47 = tpu.matmul %46, %44, %cst_29 {dimension_numbers = #tpu.dot_dimension_numbers<[1], [0], [0], [1], [0, 0, 1, 1], [], []>} : vector<16x16xbf16>, vector<16x288xbf16>, vector<16x288xf32> -> vector<16x288xf32>
    %48 = arith.addf %43, %47 : vector<16x288xf32>
    %49 = vector.extract_strided_slice %7 {offsets = [0, 38], sizes = [16, 288], strides = [1, 1]} : vector<16x342xbf16> to vector<16x288xbf16>
    %c8 = arith.constant 8 : index
    %c0_30 = arith.constant 0 : index
    %c0_31 = arith.constant 0 : index
    %50 = vector.load %arg3[%c8, %c0_30, %c0_31] : memref<9x16x16xbf16, #tpu.memory_space<vmem>>, vector<1x16x16xbf16>
    %51 = vector.shape_cast %50 : vector<1x16x16xbf16> to vector<16x16xbf16>
    %cst_32 = arith.constant dense<0.000000e+00> : vector<16x288xf32>
    %52 = tpu.matmul %51, %49, %cst_32 {dimension_numbers = #tpu.dot_dimension_numbers<[1], [0], [0], [1], [0, 0, 1, 1], [], []>} : vector<16x16xbf16>, vector<16x288xbf16>, vector<16x288xf32> -> vector<16x288xf32>
    %53 = arith.addf %48, %52 : vector<16x288xf32>
    %c0_33 = arith.constant 0 : index
    %c0_34 = arith.constant 0 : index
    %54 = vector.load %arg4[%c0_33, %c0_34] : memref<16x1xf32, #tpu.memory_space<vmem>>, vector<16x1xf32>
    %55 = vector.broadcast %54 : vector<16x1xf32> to vector<16x288xf32>
    %56 = arith.mulf %53, %55 : vector<16x288xf32>
    %c0_35 = arith.constant 0 : index
    %c0_36 = arith.constant 0 : index
    %57 = vector.load %arg5[%c0_35, %c0_36] : memref<16x1xf32, #tpu.memory_space<vmem>>, vector<16x1xf32>
    %58 = vector.broadcast %57 : vector<16x1xf32> to vector<16x288xf32>
    %59 = arith.addf %56, %58 : vector<16x288xf32>
    %cst_37 = arith.constant 0.000000e+00 : f32
    %60 = vector.broadcast %cst_37 : f32 to vector<16x288xf32>
    %61 = arith.maximumf %59, %60 : vector<16x288xf32>
    %c0_38 = arith.constant 0 : index
    %c0_39 = arith.constant 0 : index
    %c0_40 = arith.constant 0 : index
    %62 = vector.load %arg6[%c0_38, %c0_39, %c0_40] : memref<1x16x288xf32, #tpu.memory_space<vmem>>, vector<1x16x288xf32>
    %63 = vector.shape_cast %62 : vector<1x16x288xf32> to vector<16x288xf32>
    %64 = vector.shape_cast %61 : vector<16x288xf32> to vector<1x16x288xf32>
    tpu.vector_store %arg6[%c0_38, %c0_39, %c0_40], %64 {strides = array<i32>} : memref<1x16x288xf32, #tpu.memory_space<vmem>>, vector<1x16x288xf32>,
    return
  }
  func.func @transform_0(%arg0: i32) -> (i32, i32, i32) {
    %c0_i32 = arith.constant 0 : i32
    %c0_i32_0 = arith.constant 0 : i32
    %c0_i32_1 = arith.constant 0 : i32
    return %arg0, %c0_i32, %c0_i32_0 : i32, i32, i32
  }
  func.func @transform_1(%arg0: i32) -> (i32, i32, i32) {
    %c0_i32 = arith.constant 0 : i32
    %c0_i32_0 = arith.constant 0 : i32
    %c0_i32_1 = arith.constant 0 : i32
    return %arg0, %c0_i32, %c0_i32_0 : i32, i32, i32
  }
  func.func @transform_2(%arg0: i32) -> (i32, i32, i32) {
    %c0_i32 = arith.constant 0 : i32
    %c0_i32_0 = arith.constant 0 : i32
    %c0_i32_1 = arith.constant 0 : i32
    %c0_i32_2 = arith.constant 0 : i32
    return %c0_i32, %c0_i32_0, %c0_i32_1 : i32, i32, i32
  }
  func.func @transform_3(%arg0: i32) -> (i32, i32) {
    %c0_i32 = arith.constant 0 : i32
    %c0_i32_0 = arith.constant 0 : i32
    %c0_i32_1 = arith.constant 0 : i32
    return %c0_i32, %c0_i32_0 : i32, i32
  }
  func.func @transform_4(%arg0: i32) -> (i32, i32) {
    %c0_i32 = arith.constant 0 : i32
    %c0_i32_0 = arith.constant 0 : i32
    %c0_i32_1 = arith.constant 0 : i32
    return %c0_i32, %c0_i32_0 : i32, i32
  }
  func.func @transform_5(%arg0: i32) -> (i32, i32, i32) {
    %c0_i32 = arith.constant 0 : i32
    %c0_i32_0 = arith.constant 0 : i32
    %c0_i32_1 = arith.constant 0 : i32
    return %arg0, %c0_i32, %c0_i32_0 : i32, i32, i32
  }
}

module attributes {stable_mosaic.version = 11 : i64} {
  func.func @kernel(%arg0: i32, %arg1: memref<1x16x342xbf16, #tpu.memory_space<vmem>>, %arg2: memref<9x16x16xbf16, #tpu.memory_space<vmem>>, %arg3: memref<16x1xf32, #tpu.memory_space<vmem>>, %arg4: memref<16x1xf32, #tpu.memory_space<vmem>>, %arg5: memref<1x16x288xf32, #tpu.memory_space<vmem>>) attributes {dimension_semantics = [#tpu.dimension_semantics<parallel>], iteration_bounds = array<i64: 2>, scalar_prefetch = 0 : i64, scratch_operands = 0 : i64, tpu.core_type = #tpu.core_type<tc>, window_params = [{transform_indices = @transform_0, window_bounds = array<i64: 1, 16, 342>}, {pipeline_mode = #tpu.pipeline_mode<synchronous>, transform_indices = @transform_1, window_bounds = array<i64: 9, 16, 16>}, {pipeline_mode = #tpu.pipeline_mode<synchronous>, transform_indices = @transform_2, window_bounds = array<i64: 16, 1>}, {pipeline_mode = #tpu.pipeline_mode<synchronous>, transform_indices = @transform_3, window_bounds = array<i64: 16, 1>}, {transform_indices = @transform_4, window_bounds = array<i64: 1, 16, 288>}]} {
    %c0 = arith.constant 0 : index
    %c0_0 = arith.constant 0 : index
    %c0_1 = arith.constant 0 : index
    %0 = vector.load %arg1[%c0, %c0_0, %c0_1] : memref<1x16x342xbf16, #tpu.memory_space<vmem>>, vector<1x16x342xbf16>
    %1 = vector.shape_cast %0 : vector<1x16x342xbf16> to vector<16x342xbf16>
    %cst = arith.constant 0.000000e+00 : f32
    %2 = vector.broadcast %cst : f32 to vector<16x288xf32>
    %3 = vector.extract_strided_slice %1 {offsets = [0, 0], sizes = [16, 288], strides = [1, 1]} : vector<16x342xbf16> to vector<16x288xbf16>
    %c0_2 = arith.constant 0 : index
    %c0_3 = arith.constant 0 : index
    %c0_4 = arith.constant 0 : index
    %4 = vector.load %arg2[%c0_2, %c0_3, %c0_4] : memref<9x16x16xbf16, #tpu.memory_space<vmem>>, vector<1x16x16xbf16>
    %5 = vector.shape_cast %4 : vector<1x16x16xbf16> to vector<16x16xbf16>
    %cst_5 = arith.constant dense<0.000000e+00> : vector<16x288xf32>
    %6 = tpu.matmul %5, %3, %cst_5 {dimension_numbers = #tpu.dot_dimension_numbers<[1], [0], [0], [1], [0, 0, 1, 1], [], []>} : vector<16x16xbf16>, vector<16x288xbf16>, vector<16x288xf32> -> vector<16x288xf32>
    %7 = arith.addf %2, %6 : vector<16x288xf32>
    %8 = vector.extract_strided_slice %1 {offsets = [0, 1], sizes = [16, 288], strides = [1, 1]} : vector<16x342xbf16> to vector<16x288xbf16>
    %c1 = arith.constant 1 : index
    %c0_6 = arith.constant 0 : index
    %c0_7 = arith.constant 0 : index
    %9 = vector.load %arg2[%c1, %c0_6, %c0_7] : memref<9x16x16xbf16, #tpu.memory_space<vmem>>, vector<1x16x16xbf16>
    %10 = vector.shape_cast %9 : vector<1x16x16xbf16> to vector<16x16xbf16>
    %cst_8 = arith.constant dense<0.000000e+00> : vector<16x288xf32>
    %11 = tpu.matmul %10, %8, %cst_8 {dimension_numbers = #tpu.dot_dimension_numbers<[1], [0], [0], [1], [0, 0, 1, 1], [], []>} : vector<16x16xbf16>, vector<16x288xbf16>, vector<16x288xf32> -> vector<16x288xf32>
    %12 = arith.addf %7, %11 : vector<16x288xf32>
    %13 = vector.extract_strided_slice %1 {offsets = [0, 2], sizes = [16, 288], strides = [1, 1]} : vector<16x342xbf16> to vector<16x288xbf16>
    %c2 = arith.constant 2 : index
    %c0_9 = arith.constant 0 : index
    %c0_10 = arith.constant 0 : index
    %14 = vector.load %arg2[%c2, %c0_9, %c0_10] : memref<9x16x16xbf16, #tpu.memory_space<vmem>>, vector<1x16x16xbf16>
    %15 = vector.shape_cast %14 : vector<1x16x16xbf16> to vector<16x16xbf16>
    %cst_11 = arith.constant dense<0.000000e+00> : vector<16x288xf32>
    %16 = tpu.matmul %15, %13, %cst_11 {dimension_numbers = #tpu.dot_dimension_numbers<[1], [0], [0], [1], [0, 0, 1, 1], [], []>} : vector<16x16xbf16>, vector<16x288xbf16>, vector<16x288xf32> -> vector<16x288xf32>
    %17 = arith.addf %12, %16 : vector<16x288xf32>
    %18 = vector.extract_strided_slice %1 {offsets = [0, 18], sizes = [16, 288], strides = [1, 1]} : vector<16x342xbf16> to vector<16x288xbf16>
    %c3 = arith.constant 3 : index
    %c0_12 = arith.constant 0 : index
    %c0_13 = arith.constant 0 : index
    %19 = vector.load %arg2[%c3, %c0_12, %c0_13] : memref<9x16x16xbf16, #tpu.memory_space<vmem>>, vector<1x16x16xbf16>
    %20 = vector.shape_cast %19 : vector<1x16x16xbf16> to vector<16x16xbf16>
    %cst_14 = arith.constant dense<0.000000e+00> : vector<16x288xf32>
    %21 = tpu.matmul %20, %18, %cst_14 {dimension_numbers = #tpu.dot_dimension_numbers<[1], [0], [0], [1], [0, 0, 1, 1], [], []>} : vector<16x16xbf16>, vector<16x288xbf16>, vector<16x288xf32> -> vector<16x288xf32>
    %22 = arith.addf %17, %21 : vector<16x288xf32>
    %23 = vector.extract_strided_slice %1 {offsets = [0, 19], sizes = [16, 288], strides = [1, 1]} : vector<16x342xbf16> to vector<16x288xbf16>
    %c4 = arith.constant 4 : index
    %c0_15 = arith.constant 0 : index
    %c0_16 = arith.constant 0 : index
    %24 = vector.load %arg2[%c4, %c0_15, %c0_16] : memref<9x16x16xbf16, #tpu.memory_space<vmem>>, vector<1x16x16xbf16>
    %25 = vector.shape_cast %24 : vector<1x16x16xbf16> to vector<16x16xbf16>
    %cst_17 = arith.constant dense<0.000000e+00> : vector<16x288xf32>
    %26 = tpu.matmul %25, %23, %cst_17 {dimension_numbers = #tpu.dot_dimension_numbers<[1], [0], [0], [1], [0, 0, 1, 1], [], []>} : vector<16x16xbf16>, vector<16x288xbf16>, vector<16x288xf32> -> vector<16x288xf32>
    %27 = arith.addf %22, %26 : vector<16x288xf32>
    %28 = vector.extract_strided_slice %1 {offsets = [0, 20], sizes = [16, 288], strides = [1, 1]} : vector<16x342xbf16> to vector<16x288xbf16>
    %c5 = arith.constant 5 : index
    %c0_18 = arith.constant 0 : index
    %c0_19 = arith.constant 0 : index
    %29 = vector.load %arg2[%c5, %c0_18, %c0_19] : memref<9x16x16xbf16, #tpu.memory_space<vmem>>, vector<1x16x16xbf16>
    %30 = vector.shape_cast %29 : vector<1x16x16xbf16> to vector<16x16xbf16>
    %cst_20 = arith.constant dense<0.000000e+00> : vector<16x288xf32>
    %31 = tpu.matmul %30, %28, %cst_20 {dimension_numbers = #tpu.dot_dimension_numbers<[1], [0], [0], [1], [0, 0, 1, 1], [], []>} : vector<16x16xbf16>, vector<16x288xbf16>, vector<16x288xf32> -> vector<16x288xf32>
    %32 = arith.addf %27, %31 : vector<16x288xf32>
    %33 = vector.extract_strided_slice %1 {offsets = [0, 36], sizes = [16, 288], strides = [1, 1]} : vector<16x342xbf16> to vector<16x288xbf16>
    %c6 = arith.constant 6 : index
    %c0_21 = arith.constant 0 : index
    %c0_22 = arith.constant 0 : index
    %34 = vector.load %arg2[%c6, %c0_21, %c0_22] : memref<9x16x16xbf16, #tpu.memory_space<vmem>>, vector<1x16x16xbf16>
    %35 = vector.shape_cast %34 : vector<1x16x16xbf16> to vector<16x16xbf16>
    %cst_23 = arith.constant dense<0.000000e+00> : vector<16x288xf32>
    %36 = tpu.matmul %35, %33, %cst_23 {dimension_numbers = #tpu.dot_dimension_numbers<[1], [0], [0], [1], [0, 0, 1, 1], [], []>} : vector<16x16xbf16>, vector<16x288xbf16>, vector<16x288xf32> -> vector<16x288xf32>
    %37 = arith.addf %32, %36 : vector<16x288xf32>
    %38 = vector.extract_strided_slice %1 {offsets = [0, 37], sizes = [16, 288], strides = [1, 1]} : vector<16x342xbf16> to vector<16x288xbf16>
    %c7 = arith.constant 7 : index
    %c0_24 = arith.constant 0 : index
    %c0_25 = arith.constant 0 : index
    %39 = vector.load %arg2[%c7, %c0_24, %c0_25] : memref<9x16x16xbf16, #tpu.memory_space<vmem>>, vector<1x16x16xbf16>
    %40 = vector.shape_cast %39 : vector<1x16x16xbf16> to vector<16x16xbf16>
    %cst_26 = arith.constant dense<0.000000e+00> : vector<16x288xf32>
    %41 = tpu.matmul %40, %38, %cst_26 {dimension_numbers = #tpu.dot_dimension_numbers<[1], [0], [0], [1], [0, 0, 1, 1], [], []>} : vector<16x16xbf16>, vector<16x288xbf16>, vector<16x288xf32> -> vector<16x288xf32>
    %42 = arith.addf %37, %41 : vector<16x288xf32>
    %43 = vector.extract_strided_slice %1 {offsets = [0, 38], sizes = [16, 288], strides = [1, 1]} : vector<16x342xbf16> to vector<16x288xbf16>
    %c8 = arith.constant 8 : index
    %c0_27 = arith.constant 0 : index
    %c0_28 = arith.constant 0 : index
    %44 = vector.load %arg2[%c8, %c0_27, %c0_28] : memref<9x16x16xbf16, #tpu.memory_space<vmem>>, vector<1x16x16xbf16>
    %45 = vector.shape_cast %44 : vector<1x16x16xbf16> to vector<16x16xbf16>
    %cst_29 = arith.constant dense<0.000000e+00> : vector<16x288xf32>
    %46 = tpu.matmul %45, %43, %cst_29 {dimension_numbers = #tpu.dot_dimension_numbers<[1], [0], [0], [1], [0, 0, 1, 1], [], []>} : vector<16x16xbf16>, vector<16x288xbf16>, vector<16x288xf32> -> vector<16x288xf32>
    %47 = arith.addf %42, %46 : vector<16x288xf32>
    %c0_30 = arith.constant 0 : index
    %c0_31 = arith.constant 0 : index
    %48 = vector.load %arg3[%c0_30, %c0_31] : memref<16x1xf32, #tpu.memory_space<vmem>>, vector<16x1xf32>
    %49 = vector.broadcast %48 : vector<16x1xf32> to vector<16x288xf32>
    %50 = arith.mulf %47, %49 : vector<16x288xf32>
    %c0_32 = arith.constant 0 : index
    %c0_33 = arith.constant 0 : index
    %51 = vector.load %arg4[%c0_32, %c0_33] : memref<16x1xf32, #tpu.memory_space<vmem>>, vector<16x1xf32>
    %52 = vector.broadcast %51 : vector<16x1xf32> to vector<16x288xf32>
    %53 = arith.addf %50, %52 : vector<16x288xf32>
    %cst_34 = arith.constant 0.000000e+00 : f32
    %54 = vector.broadcast %cst_34 : f32 to vector<16x288xf32>
    %55 = arith.maximumf %53, %54 : vector<16x288xf32>
    %c0_35 = arith.constant 0 : index
    %c0_36 = arith.constant 0 : index
    %c0_37 = arith.constant 0 : index
    %56 = vector.load %arg5[%c0_35, %c0_36, %c0_37] : memref<1x16x288xf32, #tpu.memory_space<vmem>>, vector<1x16x288xf32>
    %57 = vector.shape_cast %56 : vector<1x16x288xf32> to vector<16x288xf32>
    %58 = vector.shape_cast %55 : vector<16x288xf32> to vector<1x16x288xf32>
    tpu.vector_store %arg5[%c0_35, %c0_36, %c0_37], %58 {strides = array<i32>} : memref<1x16x288xf32, #tpu.memory_space<vmem>>, vector<1x16x288xf32>,
    return
  }
  func.func @transform_0(%arg0: i32) -> (i32, i32, i32) {
    %c0_i32 = arith.constant 0 : i32
    %c0_i32_0 = arith.constant 0 : i32
    %c0_i32_1 = arith.constant 0 : i32
    return %arg0, %c0_i32, %c0_i32_0 : i32, i32, i32
  }
  func.func @transform_1(%arg0: i32) -> (i32, i32, i32) {
    %c0_i32 = arith.constant 0 : i32
    %c0_i32_0 = arith.constant 0 : i32
    %c0_i32_1 = arith.constant 0 : i32
    %c0_i32_2 = arith.constant 0 : i32
    return %c0_i32, %c0_i32_0, %c0_i32_1 : i32, i32, i32
  }
  func.func @transform_2(%arg0: i32) -> (i32, i32) {
    %c0_i32 = arith.constant 0 : i32
    %c0_i32_0 = arith.constant 0 : i32
    %c0_i32_1 = arith.constant 0 : i32
    return %c0_i32, %c0_i32_0 : i32, i32
  }
  func.func @transform_3(%arg0: i32) -> (i32, i32) {
    %c0_i32 = arith.constant 0 : i32
    %c0_i32_0 = arith.constant 0 : i32
    %c0_i32_1 = arith.constant 0 : i32
    return %c0_i32, %c0_i32_0 : i32, i32
  }
  func.func @transform_4(%arg0: i32) -> (i32, i32, i32) {
    %c0_i32 = arith.constant 0 : i32
    %c0_i32_0 = arith.constant 0 : i32
    %c0_i32_1 = arith.constant 0 : i32
    return %arg0, %c0_i32, %c0_i32_0 : i32, i32, i32
  }
}

</mosaic_0001>

<bundles_post_ra>
// kernel: cam_forward.5
= control target key start
LH: loop header
LB: loop body
LE: loop exit
PB: predicated region body
PF: predicated region fallthrough
CT: control target
= control target key end

     0   :  { %s728_s15 = smov 0   ;;  %s797_s0 = inlined_call_operand.vmem [shape: bf16[2,4,16,90], index: 0, kind: input, shape index: {}]   ;;  %s798_s1 = inlined_call_operand.vmem [shape: bf16[9,16,16], index: 1, kind: input, shape index: {}]   ;;  %s799_s2 = inlined_call_operand.vmem [shape: f32[16,1], index: 2, kind: input, shape index: {}]   ;;  %s800_s3 = inlined_call_operand.vmem [shape: f32[16,1], index: 3, kind: input, shape index: {}]   ;;  %s801_s4 = inlined_call_operand.vmem [shape: f32[2,16,72], index: 4, kind: output, shape index: {}]  }
   0x1 LB: > { %s573_s16 = sadd.s32 4294967295, %s697_s15   ;;  %p577_p0 = scmp.ge.s32.totalorder %s697_s15, 1  ;;  %s697_s15 = sphi %s728_s15, %s14_s15  }
   0x2   : > { %p162_p1 = scmp.lt.s32.totalorder %s697_s15, 3 }
   0x4   : > { %p163_p2 = pnand %p577_p0, %p162_p1 }
   0x5   : > { %p188_p3 = scmp.lt.s32.totalorder (!%p163_p2), %s573_s16, 1  ;;  %s699_s21 = smov (!%p163_p2), 127  }
   0x6   : > { %166 = sbr.rel (%p163_p2) target bundleno = 302 (0x12e), region = 36  ;;  %s700_s22 = smov (!%p163_p2), 119  }
   0x7   : > { %s701_s25 = smov (!%p163_p2), 118  }
   0xb   : > { %s803_s16 = smov (!%p188_p3, %s573_s16), 1  ;;  %v668_v3 = vld [vmem:[%s798_s1 + $0x8] sm:$0xff]  ;;  %vm223_vm0 = vcmask 130048   ;;  %v667_v4 = vld [vmem:[%s798_s1] sm:$0xff]  ;;  %v670_v5 = vld [vmem:[%s798_s1 + $0x18] sm:$0xff]  ;;  %v702_v12 = vmov 0  }
   0xc   : > { %s661_s17 = sshll.u32 %s803_s16, 5  ;;  %v671_v7 = vld [vmem:[%s798_s1 + $0x20] sm:$0xff]  ;;  %v486_v11 = vld [vmem:[%s799_s2 + $0x8] sm:$0xff]  ;;  %690 = vset.pattern.permute.xlu1 %v702_v12  ;;  %689 = vset.pattern.permute.xlu0 %v702_v12  ;;  %v669_v17 = vld [vmem:[%s798_s1 + $0x10] sm:$0xff]  ;;  %s662_s26 = sshll.u32 %s803_s16, 4  ;;  %vm515_vm1 = vcmask 588800  }
   0xd   : > { %s192_s20 = scalar_lea.vmem %s797_s0, %s661_s17  ;;  %v675_v9 = vld [vmem:[%s798_s1 + $0x40] sm:$0xff]  ;;  %688 = vset.pattern.permute.xlu2 %v702_v12  ;;  %v500_v14 = vld [vmem:[%s800_s3 + $0x8] sm:$0xff]  ;;  %v674_v18 = vld [vmem:[%s798_s1 + $0x38] sm:$0xff]  ;;  %s197_s29 = scalar_lea.vmem %s801_s4, %s662_s26 }
   0xe   : > { %v663_v0 = vld [vmem:[%s192_s20] sm:$0xff]  ;;  %v664_v1 = vld [vmem:[%s192_s20 + $0x8] sm:$0xff]  ;;  %v665_v2 = vld [vmem:[%s192_s20 + $0x10] sm:$0xff] }
   0xf   : > { %277 = vrot.lane.b32.xlu0 %v663_v0, %s699_s21  ;;  %433 = vrot.lane.b32.xlu1 %v664_v1, %s700_s22  ;;  %v666_v6 = vld [vmem:[%s192_s20 + $0x18] sm:$0xff]  ;;  %v499_v10 = vld [vmem:[%s800_s3] sm:$0xff] }
  0x10   : > { %463 = vrot.lane.b32.xlu2 %v663_v0, %s701_s25  ;;  %234 = vmatpush.bf16.msra.mxu0 %v664_v1  ;;  %v485_v13 = vld [vmem:[%s799_s2] sm:$0xff]  ;;  %v672_v21 = vld [vmem:[%s798_s1 + $0x28] sm:$0xff]  ;;  %v673_v22 = vld [vmem:[%s798_s1 + $0x30] sm:$0xff] }
  0x11   : > { %262 = vmatpush.bf16.msra.mxu1 %v663_v0  ;;  %323 = vmatpush.bf16.msra.mxu3 %v665_v2 }
  0x13   : > { %592 = vmatmul.msk.bf16.vlgmr.msra.gmra.mxu0 %vm223_vm0, %v668_v3 }
  0x14   : > { %601 = vmatmul.msk.bf16.vlgmr.msra.gmra.mxu1 %vm223_vm0, %v667_v4  ;;  %619 = vmatmul.msk.bf16.vlgmr.msra.gmra.mxu3 %vm223_vm0, %v670_v5 }
  0x15   : > { %356 = vmatpush.bf16.msrb.mxu0 %v666_v6 }
  0x17   : > { %403 = vrot.lane.b32.xlu0 %v663_v0, %s700_s22  ;;  %373 = vrot.lane.b32.xlu1 %v665_v2, %s699_s21 }
  0x18   : > { %489 = vperm.xlu2 %688, %v485_v13  }
  0x1f   : > { %503 = vperm.xlu1 %690, %v499_v10   ;;  %494 = vperm.xlu0 %689, %v486_v11  }
  0x20   : > { %508 = vperm.xlu2 %688, %v500_v14  }
  0x23   : > { %630 = vmatmul.msk.bf16.vlgmr.msrb.gmra.mxu0 %vm223_vm0, %v671_v7 }
  0x6a   : > { %v464_v8 = vpop.permute.xlu2 %463 }
  0x6b   : > { %476 = vmatpush.bf16.msra.mxu0 %v464_v8 }
  0x6e   : > { %658 = vmatmul.msk.bf16.vlgmr.msra.gmra.mxu0 %vm223_vm0, %v675_v9 }
  0x72   : > { %v490_v50 = vpop.permute.xlu2 %489 }
  0x7a   : > { %v509_v0 = vpop.permute.xlu2 %508 }
  0x81   : > { %v278_v15 = vpop.permute.xlu0 %277  ;;  %v434_v16 = vpop.permute.xlu1 %433 }
  0x82   : > { %290 = vmatpush.bf16.msra.mxu2 %v278_v15  ;;  %446 = vmatpush.bf16.msrb.mxu3 %v434_v16 }
  0x85   : > { %608 = vmatmul.msk.bf16.vlgmr.msra.gmra.mxu2 %vm223_vm0, %v669_v17  ;;  %651 = vmatmul.msk.bf16.vlgmr.msrb.gmra.mxu3 %vm223_vm0, %v674_v18 }
  0x89   : > { %v404_v19 = vpop.permute.xlu0 %403  ;;  %v374_v20 = vpop.permute.xlu1 %373 }
  0x8a   : > { %416 = vmatpush.bf16.msrb.mxu2 %v404_v19  ;;  %386 = vmatpush.bf16.msrb.mxu1 %v374_v20 }
  0x8d   : > { %637 = vmatmul.msk.bf16.vlgmr.msrb.gmra.mxu1 %vm223_vm0, %v672_v21 }
  0x90   : > { %v236_v23 = vpop.f32.mrf.mxu0 }
  0x91   : > { %v264_v25 = vpop.f32.mrf.mxu1  ;;  %v504_v51 = vpop.permute.xlu1 %503 }
  0x92   : > { %v265_v29 = vadd.f32 %v264_v25, %v236_v23  ;;  %v495_v61 = vpop.permute.xlu0 %494 }
  0x95   : > { %644 = vmatmul.msk.bf16.vlgmr.msrb.gmra.mxu2 %vm223_vm0, %v673_v22 }
  0x97   : > { %v325_v26 = vpop.f32.mrf.mxu3 }
  0x98   : > { %v238_v24 = vpop.f32.mrf.mxu0 }
  0x99   : > { %v266_v30 = vpop.f32.mrf.mxu1 }
  0x9a   : > { %v267_v36 = vadd.f32 %v266_v30, %v238_v24 }
  0x9f   : > { %v327_v32 = vpop.f32.mrf.mxu3 }
  0xa0   : > { %v358_v27 = vpop.f32.mrf.mxu0 }
  0xa8   : > { %v360_v35 = vpop.f32.mrf.mxu0 }
  0xeb   : > { %v478_v45 = vpop.f32.mrf.mxu0 }
  0xf3   : > { %v480_v60 = vpop.f32.mrf.mxu0 }
 0x108   : > { %v292_v28 = vpop.f32.mrf.mxu2  ;;  %v448_v42 = vpop.f32.mrf.mxu3 }
 0x109   : > { %v297_v31 = vadd.f32 %v292_v28, %v265_v29 }
 0x10a   : > { %v388_v37 = vpop.f32.mrf.mxu1 }
 0x10b   : > { %v330_v33 = vadd.f32 %v325_v26, %v297_v31 }
 0x10d   : > { %v363_v38 = vadd.f32 %v358_v27, %v330_v33 }
 0x10f   : > { %v393_v40 = vadd.f32 %v388_v37, %v363_v38 }
 0x110   : > { %v294_v34 = vpop.f32.mrf.mxu2  ;;  %v450_v57 = vpop.f32.mrf.mxu3 }
 0x111   : > { %v298_v39 = vadd.f32 %v294_v34, %v267_v36 }
 0x112   : > { %v390_v48 = vpop.f32.mrf.mxu1 }
 0x113   : > { %v331_v41 = vadd.f32 %v327_v32, %v298_v39 }
 0x115   : > { %v364_v46 = vadd.f32 %v360_v35, %v331_v41 }
 0x117   : > { %v394_v52 = vadd.f32 %v390_v48, %v364_v46 }
 0x118   : > { %v418_v43 = vpop.f32.mrf.mxu2 }
 0x119   : > { %v423_v44 = vadd.f32 %v418_v43, %v393_v40 }
 0x11b   : > { %v453_v47 = vadd.f32 %v448_v42, %v423_v44 }
 0x11d   : > { %v483_v49 = vadd.f32 %v478_v45, %v453_v47 }
 0x11f   : > { %v497_v53 = vmul.f32 %v490_v50, %v483_v49 }
 0x120   : > { %v420_v54 = vpop.f32.mrf.mxu2 }
 0x121   : > { %v511_v55 = vadd.f32 %v504_v51, %v497_v53  ;;  %v424_v56 = vadd.f32 %v420_v54, %v394_v52 }
 0x123   : > { %v513_v58 = vmax.f32 %v511_v55, 0.0  ;;  %v454_v59 = vadd.f32 %v450_v57, %v424_v56 }
 0x125   : > { %516 = vst.msk [vmem:[%s197_s29] sm:$0xff] %vm515_vm1, %v513_v58  ;;  %v484_v62 = vadd.f32 %v480_v60, %v454_v59 }
 0x127   : > { %v498_v63 = vmul.f32 %v495_v61, %v484_v62 }
 0x129   : > { %v512_v1 = vadd.f32 %v509_v0, %v498_v63 }
 0x12b   : > { %v514_v2 = vmax.f32 %v512_v1, 0.0 }
 0x12d   : > { %517 = vst.msk [vmem:[%s197_s29 + $0x8] sm:$0xff] %vm515_vm1, %v514_v2 }
 0x12e PF: > { %s14_s15 = sadd.s32 1, %s697_s15  }
 0x12f   : > { %p11_p4 = scmp.ge.s32.totalorder %s14_s15, 4  }
 0x131   :  { %13 = sbr.rel (!%p11_p4) target bundleno = 1 (0x1), region = 74 }

// kernel: cam_forward.7
= control target key start
LH: loop header
LB: loop body
LE: loop exit
PB: predicated region body
PF: predicated region fallthrough
CT: control target
= control target key end

     0   :  { %s788_s18 = smov 0   ;;  %s860_s0 = inlined_call_operand.vmem [shape: bf16[2,16,110], index: 0, kind: input, shape index: {}]   ;;  %s861_s1 = inlined_call_operand.vmem [shape: bf16[2,16,110], index: 1, kind: input, shape index: {}]   ;;  %s862_s2 = inlined_call_operand.vmem [shape: bf16[9,16,16], index: 2, kind: input, shape index: {}]   ;;  %s863_s3 = inlined_call_operand.vmem [shape: f32[16,1], index: 3, kind: input, shape index: {}]   ;;  %s864_s4 = inlined_call_operand.vmem [shape: f32[16,1], index: 4, kind: input, shape index: {}]   ;;  %s865_s5 = inlined_call_operand.vmem [shape: f32[2,16,80], index: 5, kind: output, shape index: {}]  }
   0x1 LB: > { %s627_s19 = sadd.s32 4294967295, %s747_s18   ;;  %p631_p0 = scmp.ge.s32.totalorder %s747_s18, 1  ;;  %s747_s18 = sphi %s788_s18, %s15_s18  }
   0x2   : > { %p197_p1 = scmp.lt.s32.totalorder %s747_s18, 3 }
   0x4   : > { %p198_p2 = pnand %p631_p0, %p197_p1 }
   0x5   : > { %p230_p3 = scmp.lt.s32.totalorder (!%p198_p2), %s627_s19, 1  ;;  %s749_s27 = smov (!%p198_p2), 118  }
   0x6   : > { %201 = sbr.rel (%p198_p2) target bundleno = 321 (0x141), region = 40  ;;  %s750_s28 = smov (!%p198_p2), 127  }
   0x7   : > { %s751_s29 = smov (!%p198_p2), 108   ;;  %s752_s30 = smov (!%p198_p2), 117  }
   0x8   : > { %s753_s6 = smov (!%p198_p2), 126   ;;  %s754_s7 = smov (!%p198_p2), 107  }
   0x9   : > { %s755_s8 = smov (!%p198_p2), 116   ;;  %s756_s9 = smov (!%p198_p2), 106  }
   0xb   : > { %s867_s19 = smov (!%p230_p3, %s627_s19), 1  ;;  %vm276_vm0 = vcmask 130048   ;;  %v704_v13 = vld [vmem:[%s862_s2] sm:$0xff]  ;;  %v705_v18 = vld [vmem:[%s862_s2 + $0x8] sm:$0xff]  ;;  %v707_v19 = vld [vmem:[%s862_s2 + $0x18] sm:$0xff]  ;;  %v757_v22 = vmov 0  }
   0xc   : > { %s701_s20 = sshll.u32 %s867_s19, 3  ;;  %v541_v20 = vld [vmem:[%s864_s4] sm:$0xff]  ;;  %v528_v21 = vld [vmem:[%s863_s3 + $0x8] sm:$0xff]  ;;  %740 = vset.pattern.permute.xlu1 %v757_v22  ;;  %739 = vset.pattern.permute.xlu0 %v757_v22  ;;  %v706_v26 = vld [vmem:[%s862_s2 + $0x10] sm:$0xff]  ;;  %s703_s13 = sshll.u32 %s867_s19, 4  ;;  %vm557_vm1 = vcmask 654336  }
   0xd   : > { %s234_s23 = scalar_lea.vmem %s860_s0, %s701_s20  ;;  %s239_s26 = scalar_lea.vmem %s861_s1, %s701_s20  ;;  %v527_v23 = vld [vmem:[%s863_s3] sm:$0xff]  ;;  %738 = vset.pattern.permute.xlu2 %v757_v22  ;;  %v542_v27 = vld [vmem:[%s864_s4 + $0x8] sm:$0xff]  ;;  %v711_v32 = vld [vmem:[%s862_s2 + $0x38] sm:$0xff] }
   0xe   : > { %v714_v0 = vld [vmem:[%s234_s23] sm:$0xff]   ;;  %v709_v31 = vld [vmem:[%s862_s2 + $0x28] sm:$0xff]  ;;  %v710_v33 = vld [vmem:[%s862_s2 + $0x30] sm:$0xff]  ;;  %s244_s16 = scalar_lea.vmem %s865_s5, %s703_s13 }
   0xf   : > { %v718_v1 = vld [vmem:[%s239_s26] sm:$0xff]   ;;  %v715_v2 = vunpack.c.l.bf16 %v714_v0  ;;  %v716_v3 = vunpack.c.h.bf16 %v714_v0 }
  0x10   : > { %v719_v4 = vunpack.c.l.bf16 %v718_v1  ;;  %v720_v5 = vunpack.c.h.bf16 %v718_v1  ;;  %v708_v29 = vld [vmem:[%s862_s2 + $0x20] sm:$0xff] }
  0x11   : > { %v712_v34 = vld [vmem:[%s862_s2 + $0x40] sm:$0xff] }
  0x12   : > { %v254_v6 = vmul.f32 %v719_v4, %v715_v2  ;;  %v255_v7 = vmul.f32 %v720_v5, %v716_v3 }
  0x14   : > { %v256_v8 = vpack.c.bf16 %v254_v6, %v254_v6  ;;  %v257_v9 = vpack.c.bf16 %v255_v7, %v255_v7 }
  0x16   : > { %v270_v10 = vunpack.c.l.b16 %v256_v8  ;;  %v271_v11 = vunpack.c.l.b16 %v257_v9 }
  0x18   : > { %v272_v12 = vpack.c.b16 %v271_v11, %v270_v10 }
  0x1a   : > { %355 = vrot.lane.b32.xlu1 %v272_v12, %s749_s27  ;;  %273 = vrot.lane.b32.xlu0 %v272_v12, %s750_s28 }
  0x1b   : > { %445 = vrot.lane.b32.xlu2 %v272_v12, %s751_s29  ;;  %310 = vmatpush.bf16.msra.mxu1 %v272_v12 }
  0x1e   : > { %649 = vmatmul.msk.bf16.vlgmr.msra.gmra.mxu1 %vm276_vm0, %v704_v13 }
  0x22   : > { %385 = vrot.lane.b32.xlu1 %v272_v12, %s752_s30  ;;  %325 = vrot.lane.b32.xlu0 %v272_v12, %s753_s6 }
  0x23   : > { %475 = vrot.lane.b32.xlu2 %v272_v12, %s754_s7 }
  0x2a   : > { %415 = vrot.lane.b32.xlu0 %v272_v12, %s755_s8  ;;  %505 = vrot.lane.b32.xlu1 %v272_v12, %s756_s9 }
  0x2b   : > { %531 = vperm.xlu2 %738, %v527_v23  }
  0x32   : > { %545 = vperm.xlu1 %740, %v541_v20   ;;  %536 = vperm.xlu0 %739, %v528_v21  }
  0x33   : > { %550 = vperm.xlu2 %738, %v542_v27  }
  0x75   : > { %v446_v14 = vpop.permute.xlu2 %445 }
  0x7d   : > { %v476_v15 = vpop.permute.xlu2 %475 }
  0x85   : > { %v532_v62 = vpop.permute.xlu2 %531 }
  0x8c   : > { %v356_v16 = vpop.permute.xlu1 %355  ;;  %v274_v17 = vpop.permute.xlu0 %273 }
  0x8d   : > { %287 = vmatpush.bf16.msra.mxu0 %v274_v17  ;;  %368 = vmatpush.bf16.msra.mxu3 %v356_v16  ;;  %v551_v12 = vpop.permute.xlu2 %550 }
  0x90   : > { %644 = vmatmul.msk.bf16.vlgmr.msra.gmra.mxu0 %vm276_vm0, %v705_v18  ;;  %663 = vmatmul.msk.bf16.vlgmr.msra.gmra.mxu3 %vm276_vm0, %v707_v19 }
  0x91   : > { %488 = vmatpush.bf16.msrb.mxu3 %v476_v15 }
  0x94   : > { %v386_v24 = vpop.permute.xlu1 %385  ;;  %v326_v25 = vpop.permute.xlu0 %325 }
  0x95   : > { %338 = vmatpush.bf16.msra.mxu2 %v326_v25  ;;  %398 = vmatpush.bf16.msrb.mxu0 %v386_v24 }
  0x98   : > { %656 = vmatmul.msk.bf16.vlgmr.msra.gmra.mxu2 %vm276_vm0, %v706_v26 }
  0x99   : > { %458 = vmatpush.bf16.msrb.mxu2 %v446_v14 }
  0x9b   : > { %v312_v36 = vpop.f32.mrf.mxu1 }
  0x9c   : > { %v416_v28 = vpop.permute.xlu0 %415  ;;  %v506_v30 = vpop.permute.xlu1 %505 }
  0x9d   : > { %428 = vmatpush.bf16.msrb.mxu1 %v416_v28  ;;  %518 = vmatpush.bf16.msra.mxu0 %v506_v30 }
  0xa0   : > { %670 = vmatmul.msk.bf16.vlgmr.msrb.gmra.mxu0 %vm276_vm0, %v708_v29  ;;  %677 = vmatmul.msk.bf16.vlgmr.msrb.gmra.mxu1 %vm276_vm0, %v709_v31 }
  0xa1   : > { %691 = vmatmul.msk.bf16.vlgmr.msrb.gmra.mxu3 %vm276_vm0, %v711_v32 }
  0xa3   : > { %v314_v41 = vpop.f32.mrf.mxu1 }
  0xa4   : > { %v546_v63 = vpop.permute.xlu1 %545  ;;  %v537_v9 = vpop.permute.xlu0 %536 }
  0xa8   : > { %684 = vmatmul.msk.bf16.vlgmr.msrb.gmra.mxu2 %vm276_vm0, %v710_v33 }
  0xb0   : > { %698 = vmatmul.msk.bf16.vlgmr.msra.gmra.mxu0 %vm276_vm0, %v712_v34 }
 0x10d   : > { %v289_v35 = vpop.f32.mrf.mxu0 }
 0x10e   : > { %v313_v40 = vadd.f32 %v312_v36, %v289_v35 }
 0x113   : > { %v370_v38 = vpop.f32.mrf.mxu3 }
 0x115   : > { %v291_v37 = vpop.f32.mrf.mxu0 }
 0x116   : > { %v315_v47 = vadd.f32 %v314_v41, %v291_v37 }
 0x11b   : > { %v340_v39 = vpop.f32.mrf.mxu2  ;;  %v372_v44 = vpop.f32.mrf.mxu3 }
 0x11c   : > { %v345_v43 = vadd.f32 %v340_v39, %v313_v40 }
 0x11d   : > { %v400_v42 = vpop.f32.mrf.mxu0  ;;  %v430_v48 = vpop.f32.mrf.mxu1 }
 0x11e   : > { %v375_v45 = vadd.f32 %v370_v38, %v345_v43 }
 0x120   : > { %v405_v50 = vadd.f32 %v400_v42, %v375_v45 }
 0x122   : > { %v435_v52 = vadd.f32 %v430_v48, %v405_v50 }
 0x123   : > { %v342_v46 = vpop.f32.mrf.mxu2 }
 0x124   : > { %v346_v51 = vadd.f32 %v342_v46, %v315_v47  ;;  %v490_v54 = vpop.f32.mrf.mxu3 }
 0x125   : > { %v402_v49 = vpop.f32.mrf.mxu0  ;;  %v432_v60 = vpop.f32.mrf.mxu1 }
 0x126   : > { %v376_v53 = vadd.f32 %v372_v44, %v346_v51 }
 0x128   : > { %v406_v58 = vadd.f32 %v402_v49, %v376_v53 }
 0x12a   : > { %v436_v0 = vadd.f32 %v432_v60, %v406_v58 }
 0x12b   : > { %v460_v55 = vpop.f32.mrf.mxu2 }
 0x12c   : > { %v465_v56 = vadd.f32 %v460_v55, %v435_v52  ;;  %v492_v5 = vpop.f32.mrf.mxu3 }
 0x12d   : > { %v520_v57 = vpop.f32.mrf.mxu0 }
 0x12e   : > { %v495_v59 = vadd.f32 %v490_v54, %v465_v56 }
 0x130   : > { %v525_v61 = vadd.f32 %v520_v57, %v495_v59 }
 0x132   : > { %v539_v1 = vmul.f32 %v532_v62, %v525_v61 }
 0x133   : > { %v462_v2 = vpop.f32.mrf.mxu2 }
 0x134   : > { %v553_v3 = vadd.f32 %v546_v63, %v539_v1  ;;  %v466_v4 = vadd.f32 %v462_v2, %v436_v0 }
 0x135   : > { %v522_v8 = vpop.f32.mrf.mxu0 }
 0x136   : > { %v555_v6 = vmax.f32 %v553_v3, 0.0  ;;  %v496_v7 = vadd.f32 %v492_v5, %v466_v4 }
 0x138   : > { %558 = vst.msk [vmem:[%s244_s16] sm:$0xff] %vm557_vm1, %v555_v6  ;;  %v526_v10 = vadd.f32 %v522_v8, %v496_v7 }
 0x13a   : > { %v540_v11 = vmul.f32 %v537_v9, %v526_v10 }
 0x13c   : > { %v554_v13 = vadd.f32 %v551_v12, %v540_v11 }
 0x13e   : > { %v556_v14 = vmax.f32 %v554_v13, 0.0 }
 0x140   : > { %559 = vst.msk [vmem:[%s244_s16 + $0x8] sm:$0xff] %vm557_vm1, %v556_v14 }
 0x141 PF: > { %s15_s18 = sadd.s32 1, %s747_s18  }
 0x142   : > { %p12_p4 = scmp.ge.s32.totalorder %s15_s18, 4  }
 0x144   :  { %14 = sbr.rel (!%p12_p4) target bundleno = 1 (0x1), region = 81 }

// kernel: cam_forward.6
= control target key start
LH: loop header
LB: loop body
LE: loop exit
PB: predicated region body
PF: predicated region fallthrough
CT: control target
= control target key end

     0   :  { %s1190_s18 = smov 0   ;;  %s1308_s0 = inlined_call_operand.vmem [shape: bf16[2,16,342], index: 0, kind: input, shape index: {}]   ;;  %s1309_s1 = inlined_call_operand.vmem [shape: bf16[2,16,342], index: 1, kind: input, shape index: {}]   ;;  %s1310_s2 = inlined_call_operand.vmem [shape: bf16[9,16,16], index: 2, kind: input, shape index: {}]   ;;  %s1311_s3 = inlined_call_operand.vmem [shape: f32[16,1], index: 3, kind: input, shape index: {}]   ;;  %s1312_s4 = inlined_call_operand.vmem [shape: f32[16,1], index: 4, kind: input, shape index: {}]   ;;  %s1313_s5 = inlined_call_operand.vmem [shape: f32[2,16,288], index: 5, kind: output, shape index: {}]  }
   0x1 LB: > { %s1023_s19 = sadd.s32 4294967295, %s1149_s18   ;;  %p1027_p0 = scmp.ge.s32.totalorder %s1149_s18, 1  ;;  %s1149_s18 = sphi %s1190_s18, %s15_s18  }
   0x2   : > { %p197_p1 = scmp.lt.s32.totalorder %s1149_s18, 3 }
   0x4   : > { %p198_p2 = pnand %p1027_p0, %p197_p1 }
   0x5   : > { %p230_p3 = scmp.lt.s32.totalorder (!%p198_p2), %s1023_s19, 1  ;;  %s1151_s27 = smov (!%p198_p2), 127  }
   0x6   : > { %201 = sbr.rel (%p198_p2) target bundleno = 393 (0x189), region = 40  ;;  %s1152_s28 = smov (!%p198_p2), 126  }
   0x7   : > { %s1153_s29 = smov (!%p198_p2), 110   ;;  %s1154_s30 = smov (!%p198_p2), 109  }
   0x8   : > { %s1155_s6 = smov (!%p198_p2), 108   ;;  %s1156_s7 = smov (!%p198_p2), 92  }
   0x9   : > { %s1157_s8 = smov (!%p198_p2), 91   ;;  %s1158_s9 = smov (!%p198_p2), 90  }
   0xb   : > { %s1315_s19 = smov (!%p230_p3, %s1023_s19), 1  ;;  %v1112_v39 = vld [vmem:[%s1310_s2] sm:$0xff]  ;;  %vm311_vm0 = vcmask 130048   ;;  %vm424_vm1 = vcmask 1031168   ;;  %v1215_v43 = vld [vmem:[%s1310_s2 + $0x10] sm:$0xff]  ;;  %vm305_vm2 = vcmask 1039360  }
   0xc   : > { %s1121_s20 = smul.u32 24, %s1315_s19  ;;  %v1113_v45 = vld [vmem:[%s1310_s2 + $0x8] sm:$0xff]  ;;  %vm495_vm3 = vcmask 900096   ;;  %v1115_v57 = vld [vmem:[%s1310_s2 + $0x18] sm:$0xff]  ;;  %vm566_vm4 = vcmask 891904   ;;  %vm637_vm5 = vcmask 883712  }
   0xd   : > { %vm708_vm6 = vcmask 752640   ;;  %vm779_vm7 = vcmask 744448   ;;  %vm850_vm8 = vcmask 736256   ;;  %s1122_s13 = smul.u32 48, %s1315_s19  ;;  %vm951_vm9 = vcmask 261120  }
   0xe   : > { %s234_s23 = scalar_lea.vmem %s1308_s0, %s1121_s20  ;;  %s239_s26 = scalar_lea.vmem %s1309_s1, %s1121_s20 }
   0xf   : > { %v247_v0 = vld [vmem:[%s234_s23 + $0x8] sm:$0xf]  ;;  %v249_v1 = vld [vmem:[%s234_s23 + $0x14] sm:$0xf]  ;;  %v246_v7 = vld [vmem:[%s234_s23] sm:$0xff]  ;;  %s1293_s16 = scalar_lea.vmem %s1313_s5, %s1122_s13 }
  0x10   : > { %v257_v2 = vld [vmem:[%s239_s26 + $0x8] sm:$0xf]  ;;  %v252_v3 = vunpack.c.l.bf16 %v247_v0  ;;  %v255_v4 = vunpack.c.l.bf16 %v249_v1  ;;  %v259_v5 = vld [vmem:[%s239_s26 + $0x14] sm:$0xf]  ;;  %v248_v8 = vld [vmem:[%s234_s23 + $0xc] sm:$0xff]  ;;  %v250_v10 = vunpack.c.l.bf16 %v246_v7  ;;  %v251_v11 = vunpack.c.h.bf16 %v246_v7 }
  0x11   : > { %v262_v6 = vunpack.c.l.bf16 %v257_v2  ;;  %v265_v9 = vunpack.c.l.bf16 %v259_v5  ;;  %v253_v12 = vunpack.c.l.bf16 %v248_v8  ;;  %v256_v13 = vld [vmem:[%s239_s26] sm:$0xff]  ;;  %v258_v14 = vld [vmem:[%s239_s26 + $0xc] sm:$0xff]  ;;  %v254_v16 = vunpack.c.h.bf16 %v248_v8 }
  0x12   : > { %v260_v17 = vunpack.c.l.bf16 %v256_v13  ;;  %v261_v18 = vunpack.c.h.bf16 %v256_v13  ;;  %v263_v20 = vunpack.c.l.bf16 %v258_v14  ;;  %v264_v21 = vunpack.c.h.bf16 %v258_v14 }
  0x13   : > { %v268_v15 = vmul.f32 %v262_v6, %v252_v3  ;;  %v271_v19 = vmul.f32 %v265_v9, %v255_v4  ;;  %v1117_v3 = vld [vmem:[%s1310_s2 + $0x28] sm:$0xff] }
  0x14   : > { %v266_v23 = vmul.f32 %v260_v17, %v250_v10  ;;  %v267_v24 = vmul.f32 %v261_v18, %v251_v11  ;;  %v269_v26 = vmul.f32 %v263_v20, %v253_v12  ;;  %v270_v27 = vmul.f32 %v264_v21, %v254_v16  ;;  %v1116_v10 = vld [vmem:[%s1310_s2 + $0x20] sm:$0xff] }
  0x15   : > { %v273_v22 = vpack.c.bf16 %v268_v15, %v268_v15  ;;  %v275_v25 = vpack.c.bf16 %v271_v19, %v271_v19  ;;  %v1118_v15 = vld [vmem:[%s1310_s2 + $0x30] sm:$0xff]  ;;  %v1119_v19 = vld [vmem:[%s1310_s2 + $0x38] sm:$0xff] }
  0x16   : > { %v272_v29 = vpack.c.bf16 %v267_v24, %v266_v23  ;;  %v274_v31 = vpack.c.bf16 %v270_v27, %v269_v26  ;;  %v907_v23 = vld [vmem:[%s1311_s3] sm:$0xff]  ;;  %v908_v24 = vld [vmem:[%s1311_s3 + $0x8] sm:$0xff] }
  0x17   : > { %v292_v28 = vunpack.c.l.b16 %v273_v22  ;;  %v295_v30 = vunpack.c.l.b16 %v275_v25  ;;  %v1159_v25 = vmov 0   ;;  %v926_v26 = vld [vmem:[%s1312_s4 + $0x8] sm:$0xff]  ;;  %v1120_v27 = vld [vmem:[%s1310_s2 + $0x40] sm:$0xff] }
  0x18   : > { %v291_v32 = vunpack.c.h.b16 %v272_v29  ;;  %v290_v33 = vunpack.c.l.b16 %v272_v29  ;;  %v294_v35 = vunpack.c.h.b16 %v274_v31  ;;  %v293_v36 = vunpack.c.l.b16 %v274_v31  ;;  %1140 = vset.pattern.permute.xlu0 %v1159_v25  ;;  %1141 = vset.pattern.permute.xlu1 %v1159_v25 }
  0x19   : > { %v298_v34 = vpack.c.b16 %v295_v30, %v292_v28  ;;  %1142 = vset.pattern.permute.xlu2 %v1159_v25  ;;  %v925_v28 = vld [vmem:[%s1312_s4] sm:$0xff] }
  0x1a   : > { %v297_v37 = vpack.c.b16 %v294_v35, %v291_v32  ;;  %v296_v38 = vpack.c.b16 %v293_v36, %v290_v33 }
  0x1b   : > { %303 = vrot.lane.b32.xlu0 %v298_v34, %s1151_s27 }
  0x1c   : > { %301 = vrot.lane.b32.xlu1 %v297_v37, %s1151_s27  ;;  %420 = vrot.lane.b32.xlu2 %v297_v37, %s1152_s28 }
  0x1d   : > { %375 = vmatpush.bf16.msra.mxu3 %v296_v38 }
  0x20   : > { %1044 = vmatmul.msk.bf16.vlgmr.msra.gmra.mxu3 %vm311_vm0, %v1112_v39 }
  0x23   : > { %299 = vrot.lane.b32.xlu0 %v296_v38, %s1151_s27 }
  0x24   : > { %418 = vrot.lane.b32.xlu1 %v296_v38, %s1152_s28  ;;  %422 = vrot.lane.b32.xlu2 %v298_v34, %s1152_s28 }
  0x2b   : > { %491 = vrot.lane.b32.xlu0 %v297_v37, %s1153_s29 }
  0x2c   : > { %493 = vrot.lane.b32.xlu1 %v298_v34, %s1153_s29  ;;  %489 = vrot.lane.b32.xlu2 %v296_v38, %s1153_s29 }
  0x33   : > { %564 = vrot.lane.b32.xlu0 %v298_v34, %s1154_s30 }
  0x34   : > { %560 = vrot.lane.b32.xlu1 %v296_v38, %s1154_s30  ;;  %562 = vrot.lane.b32.xlu2 %v297_v37, %s1154_s30 }
  0x3b   : > { %631 = vrot.lane.b32.xlu0 %v296_v38, %s1155_s6 }
  0x3c   : > { %633 = vrot.lane.b32.xlu1 %v297_v37, %s1155_s6  ;;  %702 = vrot.lane.b32.xlu2 %v296_v38, %s1156_s7 }
  0x43   : > { %704 = vrot.lane.b32.xlu0 %v297_v37, %s1156_s7 }
  0x44   : > { %635 = vrot.lane.b32.xlu1 %v298_v34, %s1155_s6  ;;  %706 = vrot.lane.b32.xlu2 %v298_v34, %s1156_s7 }
  0x4b   : > { %775 = vrot.lane.b32.xlu0 %v297_v37, %s1157_s8 }
  0x4c   : > { %777 = vrot.lane.b32.xlu1 %v298_v34, %s1157_s8  ;;  %773 = vrot.lane.b32.xlu2 %v296_v38, %s1157_s8 }
  0x53   : > { %848 = vrot.lane.b32.xlu0 %v298_v34, %s1158_s9 }
  0x54   : > { %844 = vrot.lane.b32.xlu1 %v296_v38, %s1158_s9  ;;  %846 = vrot.lane.b32.xlu2 %v297_v37, %s1158_s9 }
  0x5b   : > { %911 = vperm.xlu0 %1140, %v907_v23  }
  0x5c   : > { %916 = vperm.xlu1 %1141, %v908_v24   ;;  %929 = vperm.xlu2 %1142, %v925_v28  }
  0x64   : > { %934 = vperm.xlu1 %1141, %v926_v26  }
  0x76   : > { %v421_v40 = vpop.permute.xlu2 %420 }
  0x7e   : > { %v423_v41 = vpop.permute.xlu2 %422 }
  0x7f   : > { %v426_v42 = vsel %vm424_vm1, %v421_v40, %v423_v41 }
  0x80   : > { %454 = vmatpush.bf16.msrb.mxu3 %v426_v42 }
  0x83   : > { %1054 = vmatmul.msk.bf16.vlgmr.msrb.gmra.mxu3 %vm311_vm0, %v1215_v43 }
  0x86   : > { %v490_v52 = vpop.permute.xlu2 %489 }
  0x8d   : > { %v304_v44 = vpop.permute.xlu0 %303 }
  0x8e   : > { %350 = vmatpush.bf16.msra.mxu2 %v304_v44  ;;  %v302_v46 = vpop.permute.xlu1 %301  ;;  %v563_v58 = vpop.permute.xlu2 %562 }
  0x8f   : > { %v307_v47 = vsel %vm305_vm2, %v302_v46, %v304_v44 }
  0x90   : > { %336 = vmatpush.bf16.msra.mxu1 %v307_v47 }
  0x91   : > { %1039 = vmatmul.msk.bf16.vlgmr.msra.gmra.mxu2 %vm311_vm0, %v1113_v45 }
  0x93   : > { %1038 = vmatmul.msk.bf16.vlgmr.msra.gmra.mxu1 %vm311_vm0, %v1113_v45 }
  0x94   : > { %403 = vmatpush.bf16.msrb.mxu1 %v298_v34 }
  0x95   : > { %v300_v48 = vpop.permute.xlu0 %299 }
  0x96   : > { %v306_v49 = vsel %vm305_vm2, %v300_v48, %v302_v46  ;;  %v419_v50 = vpop.permute.xlu1 %418  ;;  %v703_v63 = vpop.permute.xlu2 %702 }
  0x97   : > { %322 = vmatpush.bf16.msra.mxu0 %v306_v49  ;;  %v425_v51 = vsel %vm424_vm1, %v419_v50, %v421_v40 }
  0x98   : > { %440 = vmatpush.bf16.msrb.mxu2 %v425_v51 }
  0x9a   : > { %1037 = vmatmul.msk.bf16.vlgmr.msra.gmra.mxu0 %vm311_vm0, %v1113_v45 }
  0x9b   : > { %389 = vmatpush.bf16.msrb.mxu0 %v297_v37 }
  0x9d   : > { %v492_v53 = vpop.permute.xlu0 %491 }
  0x9e   : > { %v496_v54 = vsel %vm495_vm3, %v490_v52, %v492_v53  ;;  %v494_v55 = vpop.permute.xlu1 %493  ;;  %v707_v4 = vpop.permute.xlu2 %706 }
  0x9f   : > { %468 = vmatpush.bf16.msra.mxu0 %v423_v41  ;;  %511 = vmatpush.bf16.msra.mxu1 %v496_v54  ;;  %v497_v56 = vsel %vm495_vm3, %v492_v53, %v494_v55 }
  0xa0   : > { %539 = vmatpush.bf16.msra.mxu3 %v494_v55  ;;  %525 = vmatpush.bf16.msra.mxu2 %v497_v56 }
  0xa1   : > { %1053 = vmatmul.msk.bf16.vlgmr.msrb.gmra.mxu2 %vm311_vm0, %v1215_v43 }
  0xa3   : > { %1064 = vmatmul.msk.bf16.vlgmr.msra.gmra.mxu3 %vm311_vm0, %v1115_v57  ;;  %1046 = vmatmul.msk.bf16.vlgmr.msrb.gmra.mxu1 %vm311_vm0, %v1112_v39  ;;  %v377_v29 = vpop.f32.mrf.mxu3 }
  0xa5   : > { %v565_v59 = vpop.permute.xlu0 %564 }
  0xa6   : > { %v568_v60 = vsel %vm566_vm4, %v563_v58, %v565_v59  ;;  %610 = vmatpush.bf16.msrb.mxu2 %v565_v59  ;;  %v561_v61 = vpop.permute.xlu1 %560  ;;  %v774_v12 = vpop.permute.xlu2 %773 }
  0xa7   : > { %596 = vmatpush.bf16.msrb.mxu1 %v568_v60  ;;  %v567_v62 = vsel %vm566_vm4, %v561_v61, %v563_v58 }
  0xaa   : > { %1045 = vmatmul.msk.bf16.vlgmr.msrb.gmra.mxu0 %vm311_vm0, %v1112_v39 }
  0xab   : > { %582 = vmatpush.bf16.msrb.mxu0 %v567_v62  ;;  %v379_v32 = vpop.f32.mrf.mxu3 }
  0xad   : > { %v632_v0 = vpop.permute.xlu0 %631 }
  0xae   : > { %v634_v1 = vpop.permute.xlu1 %633  ;;  %v847_v17 = vpop.permute.xlu2 %846 }
  0xaf   : > { %v638_v2 = vsel %vm637_vm5, %v632_v0, %v634_v1 }
  0xb0   : > { %653 = vmatpush.bf16.msrb.mxu3 %v638_v2 }
  0xb1   : > { %1063 = vmatmul.msk.bf16.vlgmr.msra.gmra.mxu2 %vm311_vm0, %v1115_v57 }
  0xb3   : > { %1062 = vmatmul.msk.bf16.vlgmr.msra.gmra.mxu1 %vm311_vm0, %v1115_v57  ;;  %1080 = vmatmul.msk.bf16.vlgmr.msrb.gmra.mxu3 %vm311_vm0, %v1117_v3 }
  0xb5   : > { %v705_v5 = vpop.permute.xlu0 %704 }
  0xb6   : > { %v709_v6 = vsel %vm708_vm6, %v703_v63, %v705_v5  ;;  %v710_v7 = vsel %vm708_vm6, %v705_v5, %v707_v4  ;;  %v636_v8 = vpop.permute.xlu1 %635 }
  0xb7   : > { %724 = vmatpush.bf16.msra.mxu2 %v709_v6  ;;  %738 = vmatpush.bf16.msra.mxu3 %v710_v7  ;;  %v639_v9 = vsel %vm637_vm5, %v634_v1, %v636_v8 }
  0xb8   : > { %681 = vmatpush.bf16.msra.mxu1 %v636_v8 }
  0xba   : > { %1055 = vmatmul.msk.bf16.vlgmr.msra.gmra.mxu0 %vm311_vm0, %v1215_v43 }
  0xbb   : > { %667 = vmatpush.bf16.msra.mxu0 %v639_v9 }
  0xbd   : > { %v776_v11 = vpop.permute.xlu0 %775 }
  0xbe   : > { %v778_v13 = vpop.permute.xlu1 %777  ;;  %v780_v16 = vsel %vm779_vm7, %v774_v12, %v776_v11 }
  0xbf   : > { %v781_v14 = vsel %vm779_vm7, %v776_v11, %v778_v13  ;;  %823 = vmatpush.bf16.msrb.mxu3 %v778_v13 }
  0xc1   : > { %1073 = vmatmul.msk.bf16.vlgmr.msrb.gmra.mxu2 %vm311_vm0, %v1116_v10 }
  0xc2   : > { %809 = vmatpush.bf16.msrb.mxu2 %v781_v14 }
  0xc3   : > { %1072 = vmatmul.msk.bf16.vlgmr.msrb.gmra.mxu1 %vm311_vm0, %v1116_v10  ;;  %1090 = vmatmul.msk.bf16.vlgmr.msra.gmra.mxu3 %vm311_vm0, %v1118_v15 }
  0xc4   : > { %795 = vmatpush.bf16.msrb.mxu1 %v780_v16 }
  0xc5   : > { %v849_v18 = vpop.permute.xlu0 %848 }
  0xc6   : > { %v852_v20 = vsel %vm850_vm8, %v847_v17, %v849_v18  ;;  %v845_v21 = vpop.permute.xlu1 %844 }
  0xc7   : > { %v851_v22 = vsel %vm850_vm8, %v845_v21, %v847_v17 }
  0xca   : > { %1071 = vmatmul.msk.bf16.vlgmr.msrb.gmra.mxu0 %vm311_vm0, %v1116_v10 }
  0xcb   : > { %752 = vmatpush.bf16.msrb.mxu0 %v707_v4 }
  0xd1   : > { %1089 = vmatmul.msk.bf16.vlgmr.msra.gmra.mxu2 %vm311_vm0, %v1118_v15 }
  0xd2   : > { %894 = vmatpush.bf16.msra.mxu2 %v849_v18 }
  0xd3   : > { %1082 = vmatmul.msk.bf16.vlgmr.msra.gmra.mxu1 %vm311_vm0, %v1117_v3  ;;  %1100 = vmatmul.msk.bf16.vlgmr.msrb.gmra.mxu3 %vm311_vm0, %v1119_v19 }
  0xd4   : > { %880 = vmatpush.bf16.msra.mxu1 %v852_v20 }
  0xda   : > { %1081 = vmatmul.msk.bf16.vlgmr.msra.gmra.mxu0 %vm311_vm0, %v1117_v3 }
  0xdb   : > { %866 = vmatpush.bf16.msra.mxu0 %v851_v22 }
  0xe1   : > { %1099 = vmatmul.msk.bf16.vlgmr.msrb.gmra.mxu2 %vm311_vm0, %v1119_v19 }
  0xe3   : > { %1098 = vmatmul.msk.bf16.vlgmr.msrb.gmra.mxu1 %vm311_vm0, %v1119_v19 }
  0xea   : > { %1091 = vmatmul.msk.bf16.vlgmr.msrb.gmra.mxu0 %vm311_vm0, %v1118_v15 }
  0xf1   : > { %1109 = vmatmul.msk.bf16.vlgmr.msra.gmra.mxu2 %vm311_vm0, %v1120_v27 }
  0xf3   : > { %1108 = vmatmul.msk.bf16.vlgmr.msra.gmra.mxu1 %vm311_vm0, %v1120_v27 }
  0xfa   : > { %1107 = vmatmul.msk.bf16.vlgmr.msra.gmra.mxu0 %vm311_vm0, %v1120_v27 }
 0x106   : > { %v456_v37 = vpop.f32.mrf.mxu3 }
 0x10e   : > { %v458_v45 = vpop.f32.mrf.mxu3 }
 0x110   : > { %v338_v30 = vpop.f32.mrf.mxu1 }
 0x114   : > { %v352_v31 = vpop.f32.mrf.mxu2 }
 0x117   : > { %v324_v33 = vpop.f32.mrf.mxu0 }
 0x118   : > { %v378_v34 = vadd.f32 %v377_v29, %v324_v33  ;;  %v340_v35 = vpop.f32.mrf.mxu1 }
 0x11c   : > { %v354_v36 = vpop.f32.mrf.mxu2 }
 0x11f   : > { %v326_v38 = vpop.f32.mrf.mxu0 }
 0x120   : > { %v380_v39 = vadd.f32 %v379_v32, %v326_v38  ;;  %v405_v40 = vpop.f32.mrf.mxu1 }
 0x121   : > { %v406_v41 = vadd.f32 %v405_v40, %v352_v31  ;;  %v917_v40 = vpop.permute.xlu1 %916 }
 0x124   : > { %v442_v42 = vpop.f32.mrf.mxu2 }
 0x125   : > { %v475_v43 = vadd.f32 %v442_v42, %v378_v34 }
 0x126   : > { %v541_v52 = vpop.f32.mrf.mxu3 }
 0x127   : > { %v391_v44 = vpop.f32.mrf.mxu0 }
 0x128   : > { %v407_v46 = vpop.f32.mrf.mxu1  ;;  %v392_v10 = vadd.f32 %v391_v44, %v338_v30 }
 0x129   : > { %v408_v47 = vadd.f32 %v407_v46, %v354_v36  ;;  %v930_v46 = vpop.permute.xlu2 %929 }
 0x12a   : > { %v476_v12 = vadd.f32 %v456_v37, %v392_v10 }
 0x12c   : > { %v444_v48 = vpop.f32.mrf.mxu2 }
 0x12d   : > { %v1282_v49 = vadd.f32 %v444_v48, %v380_v39 }
 0x12e   : > { %v543_v57 = vpop.f32.mrf.mxu3 }
 0x12f   : > { %v393_v50 = vpop.f32.mrf.mxu0 }
 0x130   : > { %v513_v51 = vpop.f32.mrf.mxu1  ;;  %v394_v18 = vadd.f32 %v393_v50, %v340_v35  ;;  %v912_v35 = vpop.permute.xlu0 %911 }
 0x131   : > { %v546_v24 = vadd.f32 %v513_v51, %v475_v43 }
 0x132   : > { %v479_v25 = vadd.f32 %v458_v45, %v394_v18 }
 0x134   : > { %v527_v53 = vpop.f32.mrf.mxu2 }
 0x135   : > { %v547_v16 = vadd.f32 %v527_v53, %v476_v12 }
 0x136   : > { %v655_v61 = vpop.f32.mrf.mxu3 }
 0x137   : > { %v470_v54 = vpop.f32.mrf.mxu0 }
 0x138   : > { %v515_v55 = vpop.f32.mrf.mxu1  ;;  %v477_v15 = vadd.f32 %v470_v54, %v406_v41 }
 0x13a   : > { %v548_v20 = vadd.f32 %v541_v52, %v477_v15 }
 0x13c   : > { %v529_v56 = vpop.f32.mrf.mxu2 }
 0x13d   : > { %v550_v29 = vadd.f32 %v529_v56, %v479_v25 }
 0x13e   : > { %v1284_v2 = vpop.f32.mrf.mxu3 }
 0x13f   : > { %v472_v58 = vpop.f32.mrf.mxu0 }
 0x140   : > { %v598_v59 = vpop.f32.mrf.mxu1  ;;  %v480_v27 = vadd.f32 %v472_v58, %v408_v47  ;;  %v549_v47 = vadd.f32 %v515_v55, %v1282_v49 }
 0x141   : > { %v618_v19 = vadd.f32 %v598_v59, %v547_v16 }
 0x142   : > { %v551_v38 = vadd.f32 %v543_v57, %v480_v27 }
 0x144   : > { %v612_v60 = vpop.f32.mrf.mxu2 }
 0x145   : > { %v619_v23 = vadd.f32 %v612_v60, %v548_v20 }
 0x146   : > { %v740_v7 = vpop.f32.mrf.mxu3 }
 0x147   : > { %v584_v62 = vpop.f32.mrf.mxu0 }
 0x148   : > { %v600_v63 = vpop.f32.mrf.mxu1  ;;  %v617_v30 = vadd.f32 %v584_v62, %v546_v24 }
 0x149   : > { %v621_v36 = vadd.f32 %v600_v63, %v550_v29 }
 0x14a   : > { %v688_v41 = vadd.f32 %v655_v61, %v617_v30 }
 0x14c   : > { %v614_v0 = vpop.f32.mrf.mxu2 }
 0x14d   : > { %v622_v44 = vadd.f32 %v614_v0, %v551_v38 }
 0x14e   : > { %v742_v13 = vpop.f32.mrf.mxu3 }
 0x14f   : > { %v586_v1 = vpop.f32.mrf.mxu0 }
 0x150   : > { %v683_v3 = vpop.f32.mrf.mxu1  ;;  %v620_v54 = vadd.f32 %v586_v1, %v549_v47 }
 0x151   : > { %v690_v28 = vadd.f32 %v683_v3, %v619_v23 }
 0x152   : > { %v691_v1 = vadd.f32 %v1284_v2, %v620_v54 }
 0x154   : > { %v726_v4 = vpop.f32.mrf.mxu2 }
 0x155   : > { %v759_v48 = vadd.f32 %v726_v4, %v688_v41 }
 0x156   : > { %v825_v32 = vpop.f32.mrf.mxu3 }
 0x157   : > { %v669_v5 = vpop.f32.mrf.mxu0 }
 0x158   : > { %v685_v6 = vpop.f32.mrf.mxu1  ;;  %v689_v22 = vadd.f32 %v669_v5, %v618_v19 }
 0x159   : > { %v693_v52 = vadd.f32 %v685_v6, %v622_v44 }
 0x15a   : > { %v760_v31 = vadd.f32 %v740_v7, %v689_v22 }
 0x15c   : > { %v1286_v8 = vpop.f32.mrf.mxu2 }
 0x15d   : > { %v762_v10 = vadd.f32 %v1286_v8, %v691_v1 }
 0x15e   : > { %v827_v49 = vpop.f32.mrf.mxu3 }
 0x15f   : > { %v671_v9 = vpop.f32.mrf.mxu0 }
 0x160   : > { %v797_v11 = vpop.f32.mrf.mxu1  ;;  %v692_v42 = vadd.f32 %v671_v9, %v621_v36  ;;  %v935_v9 = vpop.permute.xlu1 %934 }
 0x161   : > { %v830_v56 = vadd.f32 %v797_v11, %v759_v48 }
 0x162   : > { %v763_v58 = vadd.f32 %v742_v13, %v692_v42 }
 0x164   : > { %v811_v14 = vpop.f32.mrf.mxu2 }
 0x165   : > { %v831_v37 = vadd.f32 %v811_v14, %v760_v31 }
 0x167   : > { %v754_v17 = vpop.f32.mrf.mxu0 }
 0x168   : > { %v799_v21 = vpop.f32.mrf.mxu1  ;;  %v761_v33 = vadd.f32 %v754_v17, %v690_v28 }
 0x169   : > { %v833_v2 = vadd.f32 %v799_v21, %v762_v10 }
 0x16a   : > { %v832_v45 = vadd.f32 %v825_v32, %v761_v33 }
 0x16c   : > { %v813_v26 = vpop.f32.mrf.mxu2 }
 0x16d   : > { %v834_v62 = vadd.f32 %v813_v26, %v763_v58 }
 0x16f   : > { %v756_v34 = vpop.f32.mrf.mxu0 }
 0x170   : > { %v882_v39 = vpop.f32.mrf.mxu1  ;;  %v764_v59 = vadd.f32 %v756_v34, %v693_v52 }
 0x171   : > { %v902_v43 = vadd.f32 %v882_v39, %v831_v37 }
 0x172   : > { %v835_v6 = vadd.f32 %v827_v49, %v764_v59 }
 0x173   : > { %v920_v50 = vmul.f32 %v912_v35, %v902_v43 }
 0x174   : > { %v896_v51 = vpop.f32.mrf.mxu2 }
 0x175   : > { %v903_v53 = vadd.f32 %v896_v51, %v832_v45  ;;  %v938_v57 = vadd.f32 %v930_v46, %v920_v50 }
 0x177   : > { %v921_v60 = vmul.f32 %v912_v35, %v903_v53  ;;  %v868_v61 = vpop.f32.mrf.mxu0  ;;  %v944_v55 = vmax.f32 %v938_v57, 0.0 }
 0x178   : > { %v901_v63 = vadd.f32 %v868_v61, %v830_v56  ;;  %v884_v3 = vpop.f32.mrf.mxu1 }
 0x179   : > { %v939_v0 = vadd.f32 %v930_v46, %v921_v60  ;;  %950 = vst [vmem:[%s1293_s16 + $0x8] sm:$0xff] %v944_v55  ;;  %v905_v5 = vadd.f32 %v884_v3, %v834_v62 }
 0x17a   : > { %v919_v4 = vmul.f32 %v912_v35, %v901_v63 }
 0x17b   : > { %v945_v7 = vmax.f32 %v939_v0, 0.0  ;;  %v923_v12 = vmul.f32 %v917_v40, %v905_v5 }
 0x17c   : > { %v937_v11 = vadd.f32 %v930_v46, %v919_v4  ;;  %v898_v13 = vpop.f32.mrf.mxu2 }
 0x17d   : > { %952 = vst.msk [vmem:[%s1293_s16 + $0x10] sm:$0xff] %vm951_vm9, %v945_v7  ;;  %v906_v14 = vadd.f32 %v898_v13, %v835_v6  ;;  %v941_v16 = vadd.f32 %v935_v9, %v923_v12 }
 0x17e   : > { %v943_v15 = vmax.f32 %v937_v11, 0.0 }
 0x17f   : > { %v924_v17 = vmul.f32 %v917_v40, %v906_v14  ;;  %v870_v18 = vpop.f32.mrf.mxu0  ;;  %v947_v19 = vmax.f32 %v941_v16, 0.0 }
 0x180   : > { %949 = vst [vmem:[%s1293_s16] sm:$0xff] %v943_v15  ;;  %v904_v20 = vadd.f32 %v870_v18, %v833_v2 }
 0x181   : > { %v942_v22 = vadd.f32 %v935_v9, %v924_v17  ;;  %954 = vst [vmem:[%s1293_s16 + $0x20] sm:$0xff] %v947_v19 }
 0x182   : > { %v922_v23 = vmul.f32 %v917_v40, %v904_v20 }
 0x183   : > { %v948_v8 = vmax.f32 %v942_v22, 0.0 }
 0x184   : > { %v940_v24 = vadd.f32 %v935_v9, %v922_v23 }
 0x185   : > { %955 = vst.msk [vmem:[%s1293_s16 + $0x28] sm:$0xff] %vm951_vm9, %v948_v8 }
 0x186   : > { %v946_v25 = vmax.f32 %v940_v24, 0.0 }
 0x188   : > { %953 = vst [vmem:[%s1293_s16 + $0x18] sm:$0xff] %v946_v25 }
 0x189 PF: > { %s15_s18 = sadd.s32 1, %s1149_s18  }
 0x18a   : > { %p12_p4 = scmp.ge.s32.totalorder %s15_s18, 4  }
 0x18c   :  { %14 = sbr.rel (!%p12_p4) target bundleno = 1 (0x1), region = 81 }

// kernel: cam_forward.9
= control target key start
LH: loop header
LB: loop body
LE: loop exit
PB: predicated region body
PF: predicated region fallthrough
CT: control target
= control target key end

     0   :  { %s1114_s15 = smov 0   ;;  %s1232_s0 = inlined_call_operand.vmem [shape: bf16[2,16,342], index: 0, kind: input, shape index: {}]   ;;  %s1233_s1 = inlined_call_operand.vmem [shape: bf16[9,16,16], index: 1, kind: input, shape index: {}]   ;;  %s1234_s2 = inlined_call_operand.vmem [shape: f32[16,1], index: 2, kind: input, shape index: {}]   ;;  %s1235_s3 = inlined_call_operand.vmem [shape: f32[16,1], index: 3, kind: input, shape index: {}]   ;;  %s1236_s4 = inlined_call_operand.vmem [shape: f32[2,16,288], index: 4, kind: output, shape index: {}]  }
   0x1 LB: > { %s938_s16 = sadd.s32 4294967295, %s1078_s15   ;;  %p942_p0 = scmp.ge.s32.totalorder %s1078_s15, 1  ;;  %s1078_s15 = sphi %s1114_s15, %s14_s15  }
   0x2   : > { %p162_p1 = scmp.lt.s32.totalorder %s1078_s15, 3 }
   0x4   : > { %p163_p2 = pnand %p942_p0, %p162_p1 }
   0x5   : > { %p188_p3 = scmp.lt.s32.totalorder (!%p163_p2), %s938_s16, 1  ;;  %s1080_s21 = smov (!%p163_p2), 127  }
   0x6   : > { %166 = sbr.rel (%p163_p2) target bundleno = 384 (0x180), region = 36  ;;  %s1081_s22 = smov (!%p163_p2), 126  }
   0x7   : > { %s1082_s23 = smov (!%p163_p2), 110   ;;  %s1083_s24 = smov (!%p163_p2), 109  }
   0x8   : > { %s1084_s25 = smov (!%p163_p2), 108   ;;  %s1085_s26 = smov (!%p163_p2), 92  }
   0x9   : > { %s1086_s27 = smov (!%p163_p2), 91   ;;  %s1087_s28 = smov (!%p163_p2), 90  }
   0xb   : > { %s1238_s16 = smov (!%p188_p3, %s938_s16), 1  ;;  %v1041_v9 = vld [vmem:[%s1233_s1] sm:$0xff]  ;;  %vm238_vm0 = vcmask 130048   ;;  %vm351_vm1 = vcmask 1031168   ;;  %v1136_v13 = vld [vmem:[%s1233_s1 + $0x10] sm:$0xff]  ;;  %vm232_vm2 = vcmask 1039360  }
   0xc   : > { %s1050_s17 = smul.u32 24, %s1238_s16  ;;  %v1042_v15 = vld [vmem:[%s1233_s1 + $0x8] sm:$0xff]  ;;  %vm422_vm3 = vcmask 900096   ;;  %v1044_v27 = vld [vmem:[%s1233_s1 + $0x18] sm:$0xff]  ;;  %vm493_vm4 = vcmask 891904   ;;  %vm564_vm5 = vcmask 883712  }
   0xd   : > { %v1046_v37 = vld [vmem:[%s1233_s1 + $0x28] sm:$0xff]  ;;  %vm635_vm6 = vcmask 752640   ;;  %vm706_vm7 = vcmask 744448   ;;  %v1045_v44 = vld [vmem:[%s1233_s1 + $0x20] sm:$0xff]  ;;  %v1047_v49 = vld [vmem:[%s1233_s1 + $0x30] sm:$0xff]  ;;  %vm777_vm8 = vcmask 736256  }
   0xe   : > { %s192_s20 = scalar_lea.vmem %s1232_s0, %s1050_s17  ;;  %v1048_v53 = vld [vmem:[%s1233_s1 + $0x38] sm:$0xff]  ;;  %v834_v57 = vld [vmem:[%s1234_s2] sm:$0xff]  ;;  %v835_v58 = vld [vmem:[%s1234_s2 + $0x8] sm:$0xff]  ;;  %v1088_v59 = vmov 0   ;;  %s1051_s5 = smul.u32 48, %s1238_s16  ;;  %vm878_vm9 = vcmask 261120  }
   0xf   : > { %v961_v0 = vld [vmem:[%s192_s20 + $0x8] sm:$0xf]  ;;  %v1040_v1 = vld [vmem:[%s192_s20 + $0x10] sm:$0xf0]  ;;  %v1038_v2 = vld [vmem:[%s192_s20 + $0x4] sm:$0xf]  ;;  %1069 = vset.pattern.permute.xlu0 %v1088_v59  ;;  %1070 = vset.pattern.permute.xlu1 %v1088_v59 }
  0x10   : > { %v962_v3 = vor.u32 %v1040_v1, %v961_v0  ;;  %v955_v4 = vld [vmem:[%s192_s20 + $0xc] sm:$0xf0]  ;;  %v953_v5 = vld [vmem:[%s192_s20] sm:$0xf]  ;;  %v1039_v6 = vld [vmem:[%s192_s20 + $0x8] sm:$0xf0]  ;;  %1071 = vset.pattern.permute.xlu2 %v1088_v59  ;;  %s1216_s8 = scalar_lea.vmem %s1236_s4, %s1051_s5 }
  0x11   : > { %v958_v7 = vor.u32 %v1038_v2, %v955_v4  ;;  %v954_v8 = vor.u32 %v1039_v6, %v953_v5  ;;  %v853_v60 = vld [vmem:[%s1235_s3 + $0x8] sm:$0xff]  ;;  %v1049_v61 = vld [vmem:[%s1233_s1 + $0x40] sm:$0xff] }
  0x12   : > { %230 = vrot.lane.b32.xlu0 %v962_v3, %s1080_s21  ;;  %v852_v62 = vld [vmem:[%s1235_s3] sm:$0xff] }
  0x13   : > { %228 = vrot.lane.b32.xlu1 %v958_v7, %s1080_s21  ;;  %347 = vrot.lane.b32.xlu2 %v958_v7, %s1081_s22 }
  0x14   : > { %302 = vmatpush.bf16.msra.mxu3 %v954_v8 }
  0x17   : > { %970 = vmatmul.msk.bf16.vlgmr.msra.gmra.mxu3 %vm238_vm0, %v1041_v9 }
  0x1a   : > { %226 = vrot.lane.b32.xlu0 %v954_v8, %s1080_s21 }
  0x1b   : > { %345 = vrot.lane.b32.xlu1 %v954_v8, %s1081_s22  ;;  %349 = vrot.lane.b32.xlu2 %v962_v3, %s1081_s22 }
  0x22   : > { %418 = vrot.lane.b32.xlu0 %v958_v7, %s1082_s23 }
  0x23   : > { %420 = vrot.lane.b32.xlu1 %v962_v3, %s1082_s23  ;;  %416 = vrot.lane.b32.xlu2 %v954_v8, %s1082_s23 }
  0x2a   : > { %491 = vrot.lane.b32.xlu0 %v962_v3, %s1083_s24 }
  0x2b   : > { %487 = vrot.lane.b32.xlu1 %v954_v8, %s1083_s24  ;;  %489 = vrot.lane.b32.xlu2 %v958_v7, %s1083_s24 }
  0x32   : > { %558 = vrot.lane.b32.xlu0 %v954_v8, %s1084_s25 }
  0x33   : > { %560 = vrot.lane.b32.xlu1 %v958_v7, %s1084_s25  ;;  %629 = vrot.lane.b32.xlu2 %v954_v8, %s1085_s26 }
  0x3a   : > { %631 = vrot.lane.b32.xlu0 %v958_v7, %s1085_s26 }
  0x3b   : > { %562 = vrot.lane.b32.xlu1 %v962_v3, %s1084_s25  ;;  %633 = vrot.lane.b32.xlu2 %v962_v3, %s1085_s26 }
  0x42   : > { %702 = vrot.lane.b32.xlu0 %v958_v7, %s1086_s27 }
  0x43   : > { %704 = vrot.lane.b32.xlu1 %v962_v3, %s1086_s27  ;;  %700 = vrot.lane.b32.xlu2 %v954_v8, %s1086_s27 }
  0x4a   : > { %775 = vrot.lane.b32.xlu0 %v962_v3, %s1087_s28 }
  0x4b   : > { %771 = vrot.lane.b32.xlu1 %v954_v8, %s1087_s28  ;;  %773 = vrot.lane.b32.xlu2 %v958_v7, %s1087_s28 }
  0x52   : > { %838 = vperm.xlu0 %1069, %v834_v57  }
  0x53   : > { %843 = vperm.xlu1 %1070, %v835_v58   ;;  %856 = vperm.xlu2 %1071, %v852_v62  }
  0x5b   : > { %861 = vperm.xlu1 %1070, %v853_v60  }
  0x6d   : > { %v348_v10 = vpop.permute.xlu2 %347 }
  0x75   : > { %v350_v11 = vpop.permute.xlu2 %349 }
  0x76   : > { %v353_v12 = vsel %vm351_vm1, %v348_v10, %v350_v11 }
  0x77   : > { %381 = vmatpush.bf16.msrb.mxu3 %v353_v12 }
  0x7a   : > { %980 = vmatmul.msk.bf16.vlgmr.msrb.gmra.mxu3 %vm238_vm0, %v1136_v13 }
  0x7d   : > { %v417_v22 = vpop.permute.xlu2 %416 }
  0x84   : > { %v231_v14 = vpop.permute.xlu0 %230 }
  0x85   : > { %v229_v16 = vpop.permute.xlu1 %228  ;;  %277 = vmatpush.bf16.msra.mxu2 %v231_v14  ;;  %v490_v28 = vpop.permute.xlu2 %489 }
  0x86   : > { %v234_v17 = vsel %vm232_vm2, %v229_v16, %v231_v14 }
  0x87   : > { %263 = vmatpush.bf16.msra.mxu1 %v234_v17 }
  0x88   : > { %965 = vmatmul.msk.bf16.vlgmr.msra.gmra.mxu2 %vm238_vm0, %v1042_v15 }
  0x8a   : > { %964 = vmatmul.msk.bf16.vlgmr.msra.gmra.mxu1 %vm238_vm0, %v1042_v15 }
  0x8b   : > { %330 = vmatpush.bf16.msrb.mxu1 %v962_v3 }
  0x8c   : > { %v227_v18 = vpop.permute.xlu0 %226 }
  0x8d   : > { %v346_v19 = vpop.permute.xlu1 %345  ;;  %v233_v20 = vsel %vm232_vm2, %v227_v18, %v229_v16  ;;  %v630_v33 = vpop.permute.xlu2 %629 }
  0x8e   : > { %249 = vmatpush.bf16.msra.mxu0 %v233_v20  ;;  %v352_v21 = vsel %vm351_vm1, %v346_v19, %v348_v10 }
  0x8f   : > { %367 = vmatpush.bf16.msrb.mxu2 %v352_v21 }
  0x91   : > { %963 = vmatmul.msk.bf16.vlgmr.msra.gmra.mxu0 %vm238_vm0, %v1042_v15 }
  0x92   : > { %316 = vmatpush.bf16.msrb.mxu0 %v958_v7 }
  0x94   : > { %v419_v23 = vpop.permute.xlu0 %418 }
  0x95   : > { %v423_v24 = vsel %vm422_vm3, %v417_v22, %v419_v23  ;;  %v421_v25 = vpop.permute.xlu1 %420  ;;  %v634_v38 = vpop.permute.xlu2 %633 }
  0x96   : > { %395 = vmatpush.bf16.msra.mxu0 %v350_v11  ;;  %v424_v26 = vsel %vm422_vm3, %v419_v23, %v421_v25  ;;  %466 = vmatpush.bf16.msra.mxu3 %v421_v25 }
  0x97   : > { %438 = vmatpush.bf16.msra.mxu1 %v423_v24  ;;  %452 = vmatpush.bf16.msra.mxu2 %v424_v26 }
  0x98   : > { %979 = vmatmul.msk.bf16.vlgmr.msrb.gmra.mxu2 %vm238_vm0, %v1136_v13 }
  0x99   : > { %990 = vmatmul.msk.bf16.vlgmr.msra.gmra.mxu3 %vm238_vm0, %v1044_v27 }
  0x9a   : > { %972 = vmatmul.msk.bf16.vlgmr.msrb.gmra.mxu1 %vm238_vm0, %v1041_v9  ;;  %v304_v63 = vpop.f32.mrf.mxu3 }
  0x9c   : > { %v492_v29 = vpop.permute.xlu0 %491 }
  0x9d   : > { %v488_v30 = vpop.permute.xlu1 %487  ;;  %v495_v31 = vsel %vm493_vm4, %v490_v28, %v492_v29  ;;  %537 = vmatpush.bf16.msrb.mxu2 %v492_v29  ;;  %v701_v46 = vpop.permute.xlu2 %700 }
  0x9e   : > { %523 = vmatpush.bf16.msrb.mxu1 %v495_v31  ;;  %v494_v32 = vsel %vm493_vm4, %v488_v30, %v490_v28 }
  0xa1   : > { %971 = vmatmul.msk.bf16.vlgmr.msrb.gmra.mxu0 %vm238_vm0, %v1041_v9 }
  0xa2   : > { %509 = vmatpush.bf16.msrb.mxu0 %v494_v32  ;;  %v306_v2 = vpop.f32.mrf.mxu3 }
  0xa4   : > { %v559_v34 = vpop.permute.xlu0 %558 }
  0xa5   : > { %v561_v35 = vpop.permute.xlu1 %560  ;;  %v774_v52 = vpop.permute.xlu2 %773 }
  0xa6   : > { %v565_v36 = vsel %vm564_vm5, %v559_v34, %v561_v35 }
  0xa7   : > { %580 = vmatpush.bf16.msrb.mxu3 %v565_v36 }
  0xa8   : > { %989 = vmatmul.msk.bf16.vlgmr.msra.gmra.mxu2 %vm238_vm0, %v1044_v27 }
  0xaa   : > { %988 = vmatmul.msk.bf16.vlgmr.msra.gmra.mxu1 %vm238_vm0, %v1044_v27  ;;  %1006 = vmatmul.msk.bf16.vlgmr.msrb.gmra.mxu3 %vm238_vm0, %v1046_v37 }
  0xac   : > { %v632_v39 = vpop.permute.xlu0 %631 }
  0xad   : > { %v563_v40 = vpop.permute.xlu1 %562  ;;  %v636_v41 = vsel %vm635_vm6, %v630_v33, %v632_v39  ;;  %v637_v42 = vsel %vm635_vm6, %v632_v39, %v634_v38 }
  0xae   : > { %651 = vmatpush.bf16.msra.mxu2 %v636_v41  ;;  %665 = vmatpush.bf16.msra.mxu3 %v637_v42  ;;  %v566_v43 = vsel %vm564_vm5, %v561_v35, %v563_v40 }
  0xaf   : > { %608 = vmatpush.bf16.msra.mxu1 %v563_v40 }
  0xb1   : > { %981 = vmatmul.msk.bf16.vlgmr.msra.gmra.mxu0 %vm238_vm0, %v1136_v13 }
  0xb2   : > { %594 = vmatpush.bf16.msra.mxu0 %v566_v43 }
  0xb4   : > { %v703_v45 = vpop.permute.xlu0 %702 }
  0xb5   : > { %v705_v47 = vpop.permute.xlu1 %704  ;;  %v707_v50 = vsel %vm706_vm7, %v701_v46, %v703_v45 }
  0xb6   : > { %v708_v48 = vsel %vm706_vm7, %v703_v45, %v705_v47  ;;  %750 = vmatpush.bf16.msrb.mxu3 %v705_v47 }
  0xb8   : > { %999 = vmatmul.msk.bf16.vlgmr.msrb.gmra.mxu2 %vm238_vm0, %v1045_v44 }
  0xb9   : > { %736 = vmatpush.bf16.msrb.mxu2 %v708_v48 }
  0xba   : > { %998 = vmatmul.msk.bf16.vlgmr.msrb.gmra.mxu1 %vm238_vm0, %v1045_v44  ;;  %1016 = vmatmul.msk.bf16.vlgmr.msra.gmra.mxu3 %vm238_vm0, %v1047_v49 }
  0xbb   : > { %722 = vmatpush.bf16.msrb.mxu1 %v707_v50 }
  0xbc   : > { %v776_v51 = vpop.permute.xlu0 %775 }
  0xbd   : > { %v779_v54 = vsel %vm777_vm8, %v774_v52, %v776_v51  ;;  %v772_v55 = vpop.permute.xlu1 %771 }
  0xbe   : > { %v778_v56 = vsel %vm777_vm8, %v772_v55, %v774_v52 }
  0xc1   : > { %997 = vmatmul.msk.bf16.vlgmr.msrb.gmra.mxu0 %vm238_vm0, %v1045_v44 }
  0xc2   : > { %679 = vmatpush.bf16.msrb.mxu0 %v634_v38 }
  0xc8   : > { %1015 = vmatmul.msk.bf16.vlgmr.msra.gmra.mxu2 %vm238_vm0, %v1047_v49 }
  0xc9   : > { %821 = vmatpush.bf16.msra.mxu2 %v776_v51 }
  0xca   : > { %1008 = vmatmul.msk.bf16.vlgmr.msra.gmra.mxu1 %vm238_vm0, %v1046_v37  ;;  %1026 = vmatmul.msk.bf16.vlgmr.msrb.gmra.mxu3 %vm238_vm0, %v1048_v53 }
  0xcb   : > { %807 = vmatpush.bf16.msra.mxu1 %v779_v54 }
  0xd1   : > { %1007 = vmatmul.msk.bf16.vlgmr.msra.gmra.mxu0 %vm238_vm0, %v1046_v37 }
  0xd2   : > { %793 = vmatpush.bf16.msra.mxu0 %v778_v56 }
  0xd8   : > { %1025 = vmatmul.msk.bf16.vlgmr.msrb.gmra.mxu2 %vm238_vm0, %v1048_v53 }
  0xda   : > { %1024 = vmatmul.msk.bf16.vlgmr.msrb.gmra.mxu1 %vm238_vm0, %v1048_v53 }
  0xe1   : > { %1017 = vmatmul.msk.bf16.vlgmr.msrb.gmra.mxu0 %vm238_vm0, %v1047_v49 }
  0xe8   : > { %1035 = vmatmul.msk.bf16.vlgmr.msra.gmra.mxu2 %vm238_vm0, %v1049_v61 }
  0xea   : > { %1034 = vmatmul.msk.bf16.vlgmr.msra.gmra.mxu1 %vm238_vm0, %v1049_v61 }
  0xf1   : > { %1033 = vmatmul.msk.bf16.vlgmr.msra.gmra.mxu0 %vm238_vm0, %v1049_v61 }
  0xfd   : > { %v383_v7 = vpop.f32.mrf.mxu3 }
 0x105   : > { %v385_v16 = vpop.f32.mrf.mxu3 }
 0x107   : > { %v265_v0 = vpop.f32.mrf.mxu1 }
 0x10b   : > { %v279_v1 = vpop.f32.mrf.mxu2 }
 0x10e   : > { %v251_v3 = vpop.f32.mrf.mxu0 }
 0x10f   : > { %v267_v4 = vpop.f32.mrf.mxu1  ;;  %v305_v5 = vadd.f32 %v304_v63, %v251_v3 }
 0x113   : > { %v281_v6 = vpop.f32.mrf.mxu2 }
 0x116   : > { %v253_v8 = vpop.f32.mrf.mxu0 }
 0x117   : > { %v307_v9 = vadd.f32 %v306_v2, %v253_v8  ;;  %v332_v10 = vpop.f32.mrf.mxu1 }
 0x118   : > { %v333_v11 = vadd.f32 %v332_v10, %v279_v1 }
 0x11b   : > { %v369_v12 = vpop.f32.mrf.mxu2 }
 0x11c   : > { %v402_v13 = vadd.f32 %v369_v12, %v305_v5  ;;  %v468_v22 = vpop.f32.mrf.mxu3 }
 0x11e   : > { %v318_v14 = vpop.f32.mrf.mxu0 }
 0x11f   : > { %v334_v15 = vpop.f32.mrf.mxu1  ;;  %v319_v43 = vadd.f32 %v318_v14, %v265_v0 }
 0x120   : > { %v335_v17 = vadd.f32 %v334_v15, %v281_v6 }
 0x121   : > { %v403_v46 = vadd.f32 %v383_v7, %v319_v43  ;;  %v839_v7 = vpop.permute.xlu0 %838 }
 0x123   : > { %v371_v18 = vpop.f32.mrf.mxu2 }
 0x124   : > { %v1203_v19 = vadd.f32 %v371_v18, %v307_v9  ;;  %v470_v27 = vpop.f32.mrf.mxu3  ;;  %v844_v9 = vpop.permute.xlu1 %843 }
 0x126   : > { %v320_v20 = vpop.f32.mrf.mxu0 }
 0x127   : > { %v440_v21 = vpop.f32.mrf.mxu1  ;;  %v321_v51 = vadd.f32 %v320_v20, %v267_v4 }
 0x128   : > { %v473_v59 = vadd.f32 %v440_v21, %v402_v13  ;;  %v857_v13 = vpop.permute.xlu2 %856 }
 0x129   : > { %v406_v57 = vadd.f32 %v385_v16, %v321_v51 }
 0x12b   : > { %v454_v23 = vpop.f32.mrf.mxu2 }
 0x12c   : > { %v474_v49 = vadd.f32 %v454_v23, %v403_v46 }
 0x12d   : > { %v582_v31 = vpop.f32.mrf.mxu3 }
 0x12e   : > { %v397_v24 = vpop.f32.mrf.mxu0 }
 0x12f   : > { %v442_v25 = vpop.f32.mrf.mxu1  ;;  %v404_v50 = vadd.f32 %v397_v24, %v333_v11 }
 0x130   : > { %v476_v18 = vadd.f32 %v442_v25, %v1203_v19 }
 0x131   : > { %v475_v55 = vadd.f32 %v468_v22, %v404_v50 }
 0x133   : > { %v456_v26 = vpop.f32.mrf.mxu2 }
 0x134   : > { %v477_v61 = vadd.f32 %v456_v26, %v406_v57 }
 0x135   : > { %v1205_v37 = vpop.f32.mrf.mxu3 }
 0x136   : > { %v399_v28 = vpop.f32.mrf.mxu0 }
 0x137   : > { %v525_v29 = vpop.f32.mrf.mxu1  ;;  %v407_v62 = vadd.f32 %v399_v28, %v335_v17 }
 0x138   : > { %v545_v52 = vadd.f32 %v525_v29, %v474_v49 }
 0x139   : > { %v478_v10 = vadd.f32 %v470_v27, %v407_v62 }
 0x13b   : > { %v539_v30 = vpop.f32.mrf.mxu2 }
 0x13c   : > { %v546_v58 = vadd.f32 %v539_v30, %v475_v55 }
 0x13d   : > { %v667_v41 = vpop.f32.mrf.mxu3 }
 0x13e   : > { %v511_v32 = vpop.f32.mrf.mxu0 }
 0x13f   : > { %v527_v33 = vpop.f32.mrf.mxu1  ;;  %v544_v1 = vadd.f32 %v511_v32, %v473_v59 }
 0x140   : > { %v548_v3 = vadd.f32 %v527_v33, %v477_v61 }
 0x141   : > { %v615_v14 = vadd.f32 %v582_v31, %v544_v1 }
 0x143   : > { %v541_v34 = vpop.f32.mrf.mxu2 }
 0x144   : > { %v549_v15 = vadd.f32 %v541_v34, %v478_v10 }
 0x145   : > { %v669_v47 = vpop.f32.mrf.mxu3 }
 0x146   : > { %v513_v35 = vpop.f32.mrf.mxu0 }
 0x147   : > { %v610_v36 = vpop.f32.mrf.mxu1  ;;  %v547_v28 = vadd.f32 %v513_v35, %v476_v18 }
 0x148   : > { %v617_v63 = vadd.f32 %v610_v36, %v546_v58 }
 0x149   : > { %v618_v35 = vadd.f32 %v1205_v37, %v547_v28 }
 0x14b   : > { %v653_v38 = vpop.f32.mrf.mxu2 }
 0x14c   : > { %v686_v20 = vadd.f32 %v653_v38, %v615_v14 }
 0x14d   : > { %v752_v2 = vpop.f32.mrf.mxu3 }
 0x14e   : > { %v596_v39 = vpop.f32.mrf.mxu0 }
 0x14f   : > { %v612_v40 = vpop.f32.mrf.mxu1  ;;  %v616_v56 = vadd.f32 %v596_v39, %v545_v52 }
 0x150   : > { %v620_v22 = vadd.f32 %v612_v40, %v549_v15  ;;  %v862_v40 = vpop.permute.xlu1 %861 }
 0x151   : > { %v687_v0 = vadd.f32 %v667_v41, %v616_v56 }
 0x153   : > { %v1207_v42 = vpop.f32.mrf.mxu2 }
 0x155   : > { %v754_v19 = vpop.f32.mrf.mxu3 }
 0x156   : > { %v598_v44 = vpop.f32.mrf.mxu0 }
 0x157   : > { %v724_v45 = vpop.f32.mrf.mxu1  ;;  %v619_v11 = vadd.f32 %v598_v44, %v548_v3 }
 0x158   : > { %v757_v29 = vadd.f32 %v724_v45, %v686_v20  ;;  %v689_v45 = vadd.f32 %v1207_v42, %v618_v35 }
 0x159   : > { %v690_v23 = vadd.f32 %v669_v47, %v619_v11 }
 0x15b   : > { %v738_v48 = vpop.f32.mrf.mxu2 }
 0x15c   : > { %v758_v5 = vadd.f32 %v738_v48, %v687_v0 }
 0x15e   : > { %v681_v53 = vpop.f32.mrf.mxu0 }
 0x15f   : > { %v1209_v54 = vpop.f32.mrf.mxu1  ;;  %v688_v4 = vadd.f32 %v681_v53, %v617_v63 }
 0x160   : > { %v760_v37 = vadd.f32 %v1209_v54, %v689_v45 }
 0x161   : > { %v759_v16 = vadd.f32 %v752_v2, %v688_v4 }
 0x163   : > { %v740_v60 = vpop.f32.mrf.mxu2 }
 0x164   : > { %v761_v27 = vadd.f32 %v740_v60, %v690_v23 }
 0x166   : > { %v683_v6 = vpop.f32.mrf.mxu0 }
 0x167   : > { %v809_v8 = vpop.f32.mrf.mxu1  ;;  %v691_v30 = vadd.f32 %v683_v6, %v620_v22 }
 0x168   : > { %v829_v12 = vadd.f32 %v809_v8, %v758_v5 }
 0x169   : > { %v762_v41 = vadd.f32 %v754_v19, %v691_v30 }
 0x16a   : > { %v847_v17 = vmul.f32 %v839_v7, %v829_v12 }
 0x16b   : > { %v823_v21 = vpop.f32.mrf.mxu2 }
 0x16c   : > { %v865_v24 = vadd.f32 %v857_v13, %v847_v17  ;;  %v830_v26 = vadd.f32 %v823_v21, %v759_v16 }
 0x16e   : > { %v871_v31 = vmax.f32 %v865_v24, 0.0  ;;  %v848_v32 = vmul.f32 %v839_v7, %v830_v26  ;;  %v795_v33 = vpop.f32.mrf.mxu0 }
 0x16f   : > { %v828_v25 = vadd.f32 %v795_v33, %v757_v29  ;;  %v811_v34 = vpop.f32.mrf.mxu1 }
 0x170   : > { %877 = vst [vmem:[%s1216_s8 + $0x8] sm:$0xff] %v871_v31  ;;  %v866_v36 = vadd.f32 %v857_v13, %v848_v32  ;;  %v832_v38 = vadd.f32 %v811_v34, %v761_v27 }
 0x171   : > { %v846_v39 = vmul.f32 %v839_v7, %v828_v25 }
 0x172   : > { %v872_v43 = vmax.f32 %v866_v36, 0.0  ;;  %v850_v44 = vmul.f32 %v844_v9, %v832_v38 }
 0x173   : > { %v864_v46 = vadd.f32 %v857_v13, %v846_v39  ;;  %v825_v47 = vpop.f32.mrf.mxu2 }
 0x174   : > { %879 = vst.msk [vmem:[%s1216_s8 + $0x10] sm:$0xff] %vm878_vm9, %v872_v43  ;;  %v868_v48 = vadd.f32 %v862_v40, %v850_v44  ;;  %v833_v49 = vadd.f32 %v825_v47, %v762_v41 }
 0x175   : > { %v870_v50 = vmax.f32 %v864_v46, 0.0 }
 0x176   : > { %v874_v51 = vmax.f32 %v868_v48, 0.0  ;;  %v851_v52 = vmul.f32 %v844_v9, %v833_v49  ;;  %v797_v53 = vpop.f32.mrf.mxu0 }
 0x177   : > { %876 = vst [vmem:[%s1216_s8] sm:$0xff] %v870_v50  ;;  %v831_v55 = vadd.f32 %v797_v53, %v760_v37 }
 0x178   : > { %881 = vst [vmem:[%s1216_s8 + $0x20] sm:$0xff] %v874_v51  ;;  %v869_v56 = vadd.f32 %v862_v40, %v851_v52 }
 0x179   : > { %v849_v57 = vmul.f32 %v844_v9, %v831_v55 }
 0x17a   : > { %v875_v42 = vmax.f32 %v869_v56, 0.0 }
 0x17b   : > { %v867_v58 = vadd.f32 %v862_v40, %v849_v57 }
 0x17c   : > { %882 = vst.msk [vmem:[%s1216_s8 + $0x28] sm:$0xff] %vm878_vm9, %v875_v42 }
 0x17d   : > { %v873_v59 = vmax.f32 %v867_v58, 0.0 }
 0x17f   : > { %880 = vst [vmem:[%s1216_s8 + $0x18] sm:$0xff] %v873_v59 }
 0x180 PF: > { %s14_s15 = sadd.s32 1, %s1078_s15  }
 0x181   : > { %p11_p4 = scmp.ge.s32.totalorder %s14_s15, 4  }
 0x183   :  { %13 = sbr.rel (!%p11_p4) target bundleno = 1 (0x1), region = 74 }

</bundles_post_ra>
